<compile_context>
chip_gen: v7x
topology: tpu7x:2x2x1
jax: 0.10.0
libtpu: 0.0.40
codegen_flags: <defaults>
</compile_context>

<pallas_src>
import math
from functools import partial

import jax
import jax.numpy as jnp
from jax.experimental import pallas as pl
from jax.experimental.pallas import tpu as pltpu


# ----------------------------------------------------------------------------
# Fused encoder-stack kernel: grid = (batch_block, layer)
# ----------------------------------------------------------------------------
def encoder_stack_kernel(
    src_ref, pos_ref, kbias_ref,
    wq_ref, wk_ref, wv_ref, bq_ref, bk_ref, bv_ref,
    wo_ref, bo_ref,
    w1_ref, b1_ref, w2_ref, b2_ref,
    g1_ref, be1_ref, g2_ref, be2_ref,
    out_ref,
    *, nhead,
):
    layer = pl.program_id(1)

    # Seed the resident per-batch activation from the input at the first layer.
    @pl.when(layer == 0)
    def _init():
        out_ref[...] = src_ref[...]

    x = out_ref[0]              # (L, D) f32 — evolving activation, VMEM-resident across layers
    pos = pos_ref[0]            # (L, D) f32
    kp_bias = kbias_ref[0]      # (1, L) f32 additive key-padding bias (0 / -1e30)

    L, D = x.shape
    dh = D // nhead
    scale = 1.0 / math.sqrt(dh)
    bf16 = jnp.bfloat16

    # --- attention input projections: bf16 MXU operands, f32 accumulation -------------------
    qk_in = (x + pos).astype(bf16)          # q = k = with_pos_embed(src, pos)
    x_bf = x.astype(bf16)                   # value = src
    q = jnp.dot(qk_in, wq_ref[0], preferred_element_type=jnp.float32) + bq_ref[0]
    k = jnp.dot(qk_in, wk_ref[0], preferred_element_type=jnp.float32) + bk_ref[0]
    v = jnp.dot(x_bf, wv_ref[0], preferred_element_type=jnp.float32) + bv_ref[0]

    qb = (q * scale).astype(bf16)           # scale applied in f32, cast once
    kb = k.astype(bf16)
    vb = v.astype(bf16)

    # --- multi-head attention: per-head softmax (f32 stats), head-concat, ONE Wo matmul -----
    heads = []
    for h in range(nhead):                  # small static loop over heads only
        c0 = h * dh
        qh = qb[:, c0:c0 + dh]              # (L, dh) bf16
        kh = kb[:, c0:c0 + dh]
        vh = vb[:, c0:c0 + dh]
        s = jax.lax.dot_general(
            qh, kh, (((1,), (1,)), ((), ())),
            preferred_element_type=jnp.float32)           # (L, L) f32 scores
        s = s + kp_bias                                   # f32 masking, broadcast over queries
        m = jnp.max(s, axis=-1, keepdims=True)
        e = jnp.exp(s - m)
        p = e * pl.reciprocal(jnp.sum(e, axis=-1, keepdims=True), approx=True)
        heads.append(jnp.dot(p.astype(bf16), vh,
                             preferred_element_type=jnp.float32))     # (L, dh) f32
    attn = jnp.concatenate(heads, axis=-1)                            # (L, D) head-concat
    attn = jnp.dot(attn.astype(bf16), wo_ref[0],
                   preferred_element_type=jnp.float32) + bo_ref[0]    # single full-K projection

    # --- residual + LayerNorm1 (dropout1 == identity; stats in f32) -------------------------
    s1 = x + attn
    mu1 = jnp.mean(s1, axis=-1, keepdims=True)
    var1 = jnp.mean((s1 - mu1) ** 2, axis=-1, keepdims=True)
    x1 = (s1 - mu1) * jax.lax.rsqrt(var1 + 1e-5) * g1_ref[0] + be1_ref[0]

    # --- FFN: linear2(relu(linear1(x1))) (dropout == identity) ------------------------------
    h1 = jnp.maximum(
        jnp.dot(x1.astype(bf16), w1_ref[0], preferred_element_type=jnp.float32) + b1_ref[0],
        0.0)
    ffn = jnp.dot(h1.astype(bf16), w2_ref[0], preferred_element_type=jnp.float32) + b2_ref[0]

    # --- residual + LayerNorm2 ---------------------------------------------------------------
    s2 = x1 + ffn
    mu2 = jnp.mean(s2, axis=-1, keepdims=True)
    var2 = jnp.mean((s2 - mu2) ** 2, axis=-1, keepdims=True)
    y = (s2 - mu2) * jax.lax.rsqrt(var2 + 1e-5) * g2_ref[0] + be2_ref[0]

    out_ref[0] = y   # carries to the next layer (same resident block), flushed when b changes


# ----------------------------------------------------------------------------
# Wrapper: single pallas_call for the whole stack
# ----------------------------------------------------------------------------
def transformer_encoder_pallas(src, pos, key_padding_mask, stacked, nhead):
    B, L, D = src.shape
    NL = stacked["wq"].shape[0]
    FF = stacked["w1"].shape[2]

    # key_padding_mask: True = masked (PyTorch semantics) -> additive bias row (B, 1, L), f32
    kbias = jnp.where(key_padding_mask, -1e30, 0.0).astype(jnp.float32)[:, None, :]

    # bf16 weights for the MXU; biases / LayerNorm params stay f32.
    bf = lambda a: a.astype(jnp.bfloat16)
    wq, wk, wv, wo = bf(stacked["wq"]), bf(stacked["wk"]), bf(stacked["wv"]), bf(stacked["wo"])
    w1, w2 = bf(stacked["w1"]), bf(stacked["w2"])

    def batch_spec(shape):                    # layer-invariant, per-batch-block tensors
        zeros = (0,) * (len(shape) - 1)
        return pl.BlockSpec(shape, lambda b, l: (b,) + zeros)

    def layer_spec(shape):                    # per-layer stacked weights (leading layer dim)
        zeros = (0,) * (len(shape) - 1)
        return pl.BlockSpec(shape, lambda b, l: (l,) + zeros)

    in_specs = [
        batch_spec((1, L, D)),     # src
        batch_spec((1, L, D)),     # pos
        batch_spec((1, 1, L)),     # key-padding bias
        layer_spec((1, D, D)),     # wq
        layer_spec((1, D, D)),     # wk
        layer_spec((1, D, D)),     # wv
        layer_spec((1, 1, D)),     # bq
        layer_spec((1, 1, D)),     # bk
        layer_spec((1, 1, D)),     # bv
        layer_spec((1, D, D)),     # wo
        layer_spec((1, 1, D)),     # bo
        layer_spec((1, D, FF)),    # w1
        layer_spec((1, 1, FF)),    # b1
        layer_spec((1, FF, D)),    # w2
        layer_spec((1, 1, D)),     # b2
        layer_spec((1, 1, D)),     # g1
        layer_spec((1, 1, D)),     # be1
        layer_spec((1, 1, D)),     # g2
        layer_spec((1, 1, D)),     # be2
    ]

    out = pl.pallas_call(
        partial(encoder_stack_kernel, nhead=nhead),
        out_shape=jax.ShapeDtypeStruct((B, L, D), jnp.float32),
        grid=(B, NL),
        in_specs=in_specs,
        out_specs=batch_spec((1, L, D)),
        compiler_params=pltpu.CompilerParams(
            dimension_semantics=("parallel", "arbitrary"),
            vmem_limit_bytes=48 * 1024 * 1024,
        ),
    )(
        src, pos, kbias,
        wq, wk, wv,
        stacked["bq"], stacked["bk"], stacked["bv"],
        wo, stacked["bo"],
        w1, stacked["b1"], w2, stacked["b2"],
        stacked["g1"], stacked["be1"], stacked["g2"], stacked["be2"],
    )
    return out


# ----------------------------------------------------------------------------
# Pure-JAX f32 reference (mirrors TransformerEncoderLayer.forward_post, eval mode)
# ----------------------------------------------------------------------------
def encoder_layer_ref(x, pos, kbias, p, nhead):
    B, L, D = x.shape
    dh = D // nhead
    qk = x + pos
    q = qk @ p["wq"] + p["bq"]
    k = qk @ p["wk"] + p["bk"]
    v = x @ p["wv"] + p["bv"]
    qh = q.reshape(B, L, nhead, dh)
    kh = k.reshape(B, L, nhead, dh)
    vh = v.reshape(B, L, nhead, dh)
    scores = jnp.einsum("bqhd,bkhd->bhqk", qh, kh) / math.sqrt(dh)
    scores = scores + kbias[:, None, None, :]
    w = jax.nn.softmax(scores, axis=-1)
    attn = jnp.einsum("bhqk,bkhd->bqhd", w, vh).reshape(B, L, D)
    attn = attn @ p["wo"] + p["bo"]

    def ln(t, g, be):
        mu = t.mean(-1, keepdims=True)
        var = ((t - mu) ** 2).mean(-1, keepdims=True)
        return (t - mu) / jnp.sqrt(var + 1e-5) * g + be

    s1 = x + attn
    x1 = ln(s1, p["g1"], p["be1"])
    ffn = jnp.maximum(x1 @ p["w1"] + p["b1"], 0.0) @ p["w2"] + p["b2"]
    return ln(x1 + ffn, p["g2"], p["be2"])


# ----------------------------------------------------------------------------
# Deterministic parameter init (PyTorch parameter shapes, pre-transposed to x@W)
# ----------------------------------------------------------------------------
def xavier_uniform(key, shape_out_in):
    fan_out, fan_in = shape_out_in
    limit = math.sqrt(6.0 / (fan_in + fan_out))
    return jax.random.uniform(key, shape_out_in, jnp.float32, -limit, limit)


def init_layer_params(key, d_model, dim_ff):
    ks = jax.random.split(key, 8)
    D, FF = d_model, dim_ff
    in_proj_w = xavier_uniform(ks[0], (3 * D, D))              # PyTorch MHA in_proj (3D, D)
    in_proj_b = jax.random.uniform(ks[1], (3 * D,), jnp.float32, -0.05, 0.05)
    out_w = xavier_uniform(ks[2], (D, D))
    out_b = jax.random.uniform(ks[3], (D,), jnp.float32, -0.05, 0.05)
    w1 = xavier_uniform(ks[4], (FF, D))
    b1 = jax.random.uniform(ks[5], (FF,), jnp.float32, -0.05, 0.05)
    w2 = xavier_uniform(ks[6], (D, FF))
    b2 = jax.random.uniform(ks[7], (D,), jnp.float32, -0.05, 0.05)
    return {
        "wq": in_proj_w[0 * D:1 * D].T, "wk": in_proj_w[1 * D:2 * D].T, "wv": in_proj_w[2 * D:3 * D].T,
        "bq": in_proj_b[0 * D:1 * D][None, :], "bk": in_proj_b[1 * D:2 * D][None, :],
        "bv": in_proj_b[2 * D:3 * D][None, :],
        "wo": out_w.T, "bo": out_b[None, :],
        "w1": w1.T, "b1": b1[None, :],
        "w2": w2.T, "b2": b2[None, :],
        "g1": jnp.ones((1, D), jnp.float32), "be1": jnp.zeros((1, D), jnp.float32),
        "g2": jnp.ones((1, D), jnp.float32), "be2": jnp.zeros((1, D), jnp.float32),
    }


# ----------------------------------------------------------------------------
# Main
# ----------------------------------------------------------------------------
if __name__ == "__main__":
    B, L = 2, 8
    D, nhead, FF = 32, 4, 64
    num_layers = 2

    key = jax.random.PRNGKey(0)
    k_src, k_pos, k_params = jax.random.split(key, 3)

    src = jax.random.normal(k_src, (B, L, D), jnp.float32)
    pos = jax.random.normal(k_pos, (B, L, D), jnp.float32) * 0.1

    # key-padding mask, PyTorch semantics: True = masked position
    key_padding_mask = jnp.array(
        [[False] * 6 + [True] * 2, [False] * 5 + [True] * 3], dtype=bool
    )  # (B, L)

    layer_keys = jax.random.split(k_params, num_layers)
    layer_params = [init_layer_params(lk, D, FF) for lk in layer_keys]
    stacked = {name: jnp.stack([p[name] for p in layer_params], axis=0)
               for name in layer_params[0]}

    out = transformer_encoder_pallas(src, pos, key_padding_mask, stacked, nhead)
    out = jax.block_until_ready(out)

    kbias = jnp.where(key_padding_mask, -1e30, 0.0).astype(jnp.float32)
    ref = src
    for p in layer_params:
        ref = encoder_layer_ref(ref, pos, kbias, p, nhead)
    ref = jax.block_until_ready(ref)

    assert out.shape == (B, L, D)
    assert bool(jnp.all(jnp.isfinite(out)))
    # Tolerance reflects bf16 MXU operands in the kernel vs the f32 reference (2 layers).
    assert bool(jnp.allclose(out, ref, atol=5e-2, rtol=5e-2)), "mismatch vs reference"

    print("KERNEL_OK")
</pallas_src>

<mosaic_0001>
module attributes {stable_mosaic.version = 11 : i64} {
  func.func @encoder_stack_kernel(%arg0: i32, %arg1: i32, %arg2: memref<1x8x32xf32, #tpu.memory_space<vmem>>, %arg3: memref<1x8x32xf32, #tpu.memory_space<vmem>>, %arg4: memref<1x1x8xf32, #tpu.memory_space<vmem>>, %arg5: memref<1x32x32xbf16, #tpu.memory_space<vmem>>, %arg6: memref<1x32x32xbf16, #tpu.memory_space<vmem>>, %arg7: memref<1x32x32xbf16, #tpu.memory_space<vmem>>, %arg8: memref<1x1x32xf32, #tpu.memory_space<vmem>>, %arg9: memref<1x1x32xf32, #tpu.memory_space<vmem>>, %arg10: memref<1x1x32xf32, #tpu.memory_space<vmem>>, %arg11: memref<1x32x32xbf16, #tpu.memory_space<vmem>>, %arg12: memref<1x1x32xf32, #tpu.memory_space<vmem>>, %arg13: memref<1x32x64xbf16, #tpu.memory_space<vmem>>, %arg14: memref<1x1x64xf32, #tpu.memory_space<vmem>>, %arg15: memref<1x64x32xbf16, #tpu.memory_space<vmem>>, %arg16: memref<1x1x32xf32, #tpu.memory_space<vmem>>, %arg17: memref<1x1x32xf32, #tpu.memory_space<vmem>>, %arg18: memref<1x1x32xf32, #tpu.memory_space<vmem>>, %arg19: memref<1x1x32xf32, #tpu.memory_space<vmem>>, %arg20: memref<1x1x32xf32, #tpu.memory_space<vmem>>, %arg21: memref<1x8x32xf32, #tpu.memory_space<vmem>>) attributes {dimension_semantics = [#tpu.dimension_semantics<parallel>, #tpu.dimension_semantics<arbitrary>], iteration_bounds = array<i64: 2, 2>, scalar_prefetch = 0 : i64, scratch_operands = 0 : i64, tpu.core_type = #tpu.core_type<tc>, window_params = [{transform_indices = @transform_0, window_bounds = array<i64: 1, 8, 32>}, {transform_indices = @transform_1, window_bounds = array<i64: 1, 8, 32>}, {transform_indices = @transform_2, window_bounds = array<i64: 1, 1, 8>}, {transform_indices = @transform_3, window_bounds = array<i64: 1, 32, 32>}, {transform_indices = @transform_4, window_bounds = array<i64: 1, 32, 32>}, {transform_indices = @transform_5, window_bounds = array<i64: 1, 32, 32>}, {transform_indices = @transform_6, window_bounds = array<i64: 1, 1, 32>}, {transform_indices = @transform_7, window_bounds = array<i64: 1, 1, 32>}, {transform_indices = @transform_8, window_bounds = array<i64: 1, 1, 32>}, {transform_indices = @transform_9, window_bounds = array<i64: 1, 32, 32>}, {transform_indices = @transform_10, window_bounds = array<i64: 1, 1, 32>}, {transform_indices = @transform_11, window_bounds = array<i64: 1, 32, 64>}, {transform_indices = @transform_12, window_bounds = array<i64: 1, 1, 64>}, {transform_indices = @transform_13, window_bounds = array<i64: 1, 64, 32>}, {transform_indices = @transform_14, window_bounds = array<i64: 1, 1, 32>}, {transform_indices = @transform_15, window_bounds = array<i64: 1, 1, 32>}, {transform_indices = @transform_16, window_bounds = array<i64: 1, 1, 32>}, {transform_indices = @transform_17, window_bounds = array<i64: 1, 1, 32>}, {transform_indices = @transform_18, window_bounds = array<i64: 1, 1, 32>}, {transform_indices = @transform_19, window_bounds = array<i64: 1, 8, 32>}]} {
    %c0_i32 = arith.constant 0 : i32
    %0 = arith.cmpi eq, %arg1, %c0_i32 : i32
    %1 = arith.extui %0 : i1 to i32
    %c0_i32_0 = arith.constant 0 : i32
    %2 = arith.cmpi ne, %1, %c0_i32_0 : i32
    scf.if %2 {
      %c0_93 = arith.constant 0 : index
      %c0_94 = arith.constant 0 : index
      %c0_95 = arith.constant 0 : index
      %194 = vector.load %arg2[%c0_93, %c0_94, %c0_95] : memref<1x8x32xf32, #tpu.memory_space<vmem>>, vector<1x8x32xf32>
      %c0_96 = arith.constant 0 : index
      %c0_97 = arith.constant 0 : index
      %c0_98 = arith.constant 0 : index
      %195 = vector.load %arg21[%c0_96, %c0_97, %c0_98] : memref<1x8x32xf32, #tpu.memory_space<vmem>>, vector<1x8x32xf32>
      tpu.vector_store %arg21[%c0_96, %c0_97, %c0_98], %194 {strides = array<i32>} : memref<1x8x32xf32, #tpu.memory_space<vmem>>, vector<1x8x32xf32>,
    } else {
    }
    %c0 = arith.constant 0 : index
    %c0_1 = arith.constant 0 : index
    %c0_2 = arith.constant 0 : index
    %3 = vector.load %arg21[%c0, %c0_1, %c0_2] : memref<1x8x32xf32, #tpu.memory_space<vmem>>, vector<1x8x32xf32>
    %4 = vector.shape_cast %3 : vector<1x8x32xf32> to vector<8x32xf32>
    %c0_3 = arith.constant 0 : index
    %c0_4 = arith.constant 0 : index
    %c0_5 = arith.constant 0 : index
    %5 = vector.load %arg3[%c0_3, %c0_4, %c0_5] : memref<1x8x32xf32, #tpu.memory_space<vmem>>, vector<1x8x32xf32>
    %6 = vector.shape_cast %5 : vector<1x8x32xf32> to vector<8x32xf32>
    %c0_6 = arith.constant 0 : index
    %c0_7 = arith.constant 0 : index
    %c0_8 = arith.constant 0 : index
    %7 = vector.load %arg4[%c0_6, %c0_7, %c0_8] : memref<1x1x8xf32, #tpu.memory_space<vmem>>, vector<1x1x8xf32>
    %8 = vector.shape_cast %7 : vector<1x1x8xf32> to vector<1x8xf32>
    %9 = arith.addf %4, %6 : vector<8x32xf32>
    %10 = arith.truncf %9 : vector<8x32xf32> to vector<8x32xbf16>
    %11 = arith.truncf %4 : vector<8x32xf32> to vector<8x32xbf16>
    %c0_9 = arith.constant 0 : index
    %c0_10 = arith.constant 0 : index
    %c0_11 = arith.constant 0 : index
    %12 = vector.load %arg5[%c0_9, %c0_10, %c0_11] : memref<1x32x32xbf16, #tpu.memory_space<vmem>>, vector<1x32x32xbf16>
    %13 = vector.shape_cast %12 : vector<1x32x32xbf16> to vector<32x32xbf16>
    %cst = arith.constant dense<0.000000e+00> : vector<8x32xf32>
    %14 = tpu.matmul %10, %13, %cst {dimension_numbers = #tpu.dot_dimension_numbers<[1], [0], [0], [1], [0, 0, 1, 1], [], []>} : vector<8x32xbf16>, vector<32x32xbf16>, vector<8x32xf32> -> vector<8x32xf32>
    %c0_12 = arith.constant 0 : index
    %c0_13 = arith.constant 0 : index
    %c0_14 = arith.constant 0 : index
    %15 = vector.load %arg8[%c0_12, %c0_13, %c0_14] : memref<1x1x32xf32, #tpu.memory_space<vmem>>, vector<1x1x32xf32>
    %16 = vector.shape_cast %15 : vector<1x1x32xf32> to vector<1x32xf32>
    %17 = vector.broadcast %16 : vector<1x32xf32> to vector<8x32xf32>
    %18 = arith.addf %14, %17 : vector<8x32xf32>
    %c0_15 = arith.constant 0 : index
    %c0_16 = arith.constant 0 : index
    %c0_17 = arith.constant 0 : index
    %19 = vector.load %arg6[%c0_15, %c0_16, %c0_17] : memref<1x32x32xbf16, #tpu.memory_space<vmem>>, vector<1x32x32xbf16>
    %20 = vector.shape_cast %19 : vector<1x32x32xbf16> to vector<32x32xbf16>
    %cst_18 = arith.constant dense<0.000000e+00> : vector<8x32xf32>
    %21 = tpu.matmul %10, %20, %cst_18 {dimension_numbers = #tpu.dot_dimension_numbers<[1], [0], [0], [1], [0, 0, 1, 1], [], []>} : vector<8x32xbf16>, vector<32x32xbf16>, vector<8x32xf32> -> vector<8x32xf32>
    %c0_19 = arith.constant 0 : index
    %c0_20 = arith.constant 0 : index
    %c0_21 = arith.constant 0 : index
    %22 = vector.load %arg9[%c0_19, %c0_20, %c0_21] : memref<1x1x32xf32, #tpu.memory_space<vmem>>, vector<1x1x32xf32>
    %23 = vector.shape_cast %22 : vector<1x1x32xf32> to vector<1x32xf32>
    %24 = vector.broadcast %23 : vector<1x32xf32> to vector<8x32xf32>
    %25 = arith.addf %21, %24 : vector<8x32xf32>
    %c0_22 = arith.constant 0 : index
    %c0_23 = arith.constant 0 : index
    %c0_24 = arith.constant 0 : index
    %26 = vector.load %arg7[%c0_22, %c0_23, %c0_24] : memref<1x32x32xbf16, #tpu.memory_space<vmem>>, vector<1x32x32xbf16>
    %27 = vector.shape_cast %26 : vector<1x32x32xbf16> to vector<32x32xbf16>
    %cst_25 = arith.constant dense<0.000000e+00> : vector<8x32xf32>
    %28 = tpu.matmul %11, %27, %cst_25 {dimension_numbers = #tpu.dot_dimension_numbers<[1], [0], [0], [1], [0, 0, 1, 1], [], []>} : vector<8x32xbf16>, vector<32x32xbf16>, vector<8x32xf32> -> vector<8x32xf32>
    %c0_26 = arith.constant 0 : index
    %c0_27 = arith.constant 0 : index
    %c0_28 = arith.constant 0 : index
    %29 = vector.load %arg10[%c0_26, %c0_27, %c0_28] : memref<1x1x32xf32, #tpu.memory_space<vmem>>, vector<1x1x32xf32>
    %30 = vector.shape_cast %29 : vector<1x1x32xf32> to vector<1x32xf32>
    %31 = vector.broadcast %30 : vector<1x32xf32> to vector<8x32xf32>
    %32 = arith.addf %28, %31 : vector<8x32xf32>
    %cst_29 = arith.constant 0.353553385 : f32
    %33 = vector.broadcast %cst_29 : f32 to vector<8x32xf32>
    %34 = arith.mulf %18, %33 : vector<8x32xf32>
    %35 = arith.truncf %34 : vector<8x32xf32> to vector<8x32xbf16>
    %36 = arith.truncf %25 : vector<8x32xf32> to vector<8x32xbf16>
    %37 = arith.truncf %32 : vector<8x32xf32> to vector<8x32xbf16>
    %38 = vector.extract_strided_slice %35 {offsets = [0, 0], sizes = [8, 8], strides = [1, 1]} : vector<8x32xbf16> to vector<8x8xbf16>
    %39 = vector.extract_strided_slice %36 {offsets = [0, 0], sizes = [8, 8], strides = [1, 1]} : vector<8x32xbf16> to vector<8x8xbf16>
    %40 = vector.extract_strided_slice %37 {offsets = [0, 0], sizes = [8, 8], strides = [1, 1]} : vector<8x32xbf16> to vector<8x8xbf16>
    %cst_30 = arith.constant dense<0.000000e+00> : vector<8x8xf32>
    %41 = tpu.matmul %38, %39, %cst_30 {dimension_numbers = #tpu.dot_dimension_numbers<[1], [1], [0], [0], [0, 0, 1, 0], [], []>} : vector<8x8xbf16>, vector<8x8xbf16>, vector<8x8xf32> -> vector<8x8xf32>
    %42 = vector.broadcast %8 : vector<1x8xf32> to vector<8x8xf32>
    %43 = arith.addf %41, %42 : vector<8x8xf32>
    %cst_31 = arith.constant dense<0xFF800000> : vector<8xf32>
    %44 = vector.multi_reduction <maximumf>, %43, %cst_31 [1] : vector<8x8xf32> to vector<8xf32>
    %45 = vector.shape_cast %44 : vector<8xf32> to vector<8x1xf32>
    %46 = vector.broadcast %45 : vector<8x1xf32> to vector<8x8xf32>
    %47 = arith.subf %43, %46 : vector<8x8xf32>
    %48 = math.exp %47 : vector<8x8xf32>
    %cst_32 = arith.constant dense<0.000000e+00> : vector<8xf32>
    %49 = vector.multi_reduction <add>, %48, %cst_32 [1] : vector<8x8xf32> to vector<8xf32>
    %50 = vector.shape_cast %49 : vector<8xf32> to vector<8x1xf32>
    %51 = tpu.reciprocal %50 {approx = true} : vector<8x1xf32> -> vector<8x1xf32>
    %52 = vector.broadcast %51 : vector<8x1xf32> to vector<8x8xf32>
    %53 = arith.mulf %48, %52 : vector<8x8xf32>
    %54 = arith.truncf %53 : vector<8x8xf32> to vector<8x8xbf16>
    %cst_33 = arith.constant dense<0.000000e+00> : vector<8x8xf32>
    %55 = tpu.matmul %54, %40, %cst_33 {dimension_numbers = #tpu.dot_dimension_numbers<[1], [0], [0], [1], [0, 0, 1, 1], [], []>} : vector<8x8xbf16>, vector<8x8xbf16>, vector<8x8xf32> -> vector<8x8xf32>
    %56 = vector.extract_strided_slice %35 {offsets = [0, 8], sizes = [8, 8], strides = [1, 1]} : vector<8x32xbf16> to vector<8x8xbf16>
    %57 = vector.extract_strided_slice %36 {offsets = [0, 8], sizes = [8, 8], strides = [1, 1]} : vector<8x32xbf16> to vector<8x8xbf16>
    %58 = vector.extract_strided_slice %37 {offsets = [0, 8], sizes = [8, 8], strides = [1, 1]} : vector<8x32xbf16> to vector<8x8xbf16>
    %cst_34 = arith.constant dense<0.000000e+00> : vector<8x8xf32>
    %59 = tpu.matmul %56, %57, %cst_34 {dimension_numbers = #tpu.dot_dimension_numbers<[1], [1], [0], [0], [0, 0, 1, 0], [], []>} : vector<8x8xbf16>, vector<8x8xbf16>, vector<8x8xf32> -> vector<8x8xf32>
    %60 = vector.broadcast %8 : vector<1x8xf32> to vector<8x8xf32>
    %61 = arith.addf %59, %60 : vector<8x8xf32>
    %cst_35 = arith.constant dense<0xFF800000> : vector<8xf32>
    %62 = vector.multi_reduction <maximumf>, %61, %cst_35 [1] : vector<8x8xf32> to vector<8xf32>
    %63 = vector.shape_cast %62 : vector<8xf32> to vector<8x1xf32>
    %64 = vector.broadcast %63 : vector<8x1xf32> to vector<8x8xf32>
    %65 = arith.subf %61, %64 : vector<8x8xf32>
    %66 = math.exp %65 : vector<8x8xf32>
    %cst_36 = arith.constant dense<0.000000e+00> : vector<8xf32>
    %67 = vector.multi_reduction <add>, %66, %cst_36 [1] : vector<8x8xf32> to vector<8xf32>
    %68 = vector.shape_cast %67 : vector<8xf32> to vector<8x1xf32>
    %69 = tpu.reciprocal %68 {approx = true} : vector<8x1xf32> -> vector<8x1xf32>
    %70 = vector.broadcast %69 : vector<8x1xf32> to vector<8x8xf32>
    %71 = arith.mulf %66, %70 : vector<8x8xf32>
    %72 = arith.truncf %71 : vector<8x8xf32> to vector<8x8xbf16>
    %cst_37 = arith.constant dense<0.000000e+00> : vector<8x8xf32>
    %73 = tpu.matmul %72, %58, %cst_37 {dimension_numbers = #tpu.dot_dimension_numbers<[1], [0], [0], [1], [0, 0, 1, 1], [], []>} : vector<8x8xbf16>, vector<8x8xbf16>, vector<8x8xf32> -> vector<8x8xf32>
    %74 = vector.extract_strided_slice %35 {offsets = [0, 16], sizes = [8, 8], strides = [1, 1]} : vector<8x32xbf16> to vector<8x8xbf16>
    %75 = vector.extract_strided_slice %36 {offsets = [0, 16], sizes = [8, 8], strides = [1, 1]} : vector<8x32xbf16> to vector<8x8xbf16>
    %76 = vector.extract_strided_slice %37 {offsets = [0, 16], sizes = [8, 8], strides = [1, 1]} : vector<8x32xbf16> to vector<8x8xbf16>
    %cst_38 = arith.constant dense<0.000000e+00> : vector<8x8xf32>
    %77 = tpu.matmul %74, %75, %cst_38 {dimension_numbers = #tpu.dot_dimension_numbers<[1], [1], [0], [0], [0, 0, 1, 0], [], []>} : vector<8x8xbf16>, vector<8x8xbf16>, vector<8x8xf32> -> vector<8x8xf32>
    %78 = vector.broadcast %8 : vector<1x8xf32> to vector<8x8xf32>
    %79 = arith.addf %77, %78 : vector<8x8xf32>
    %cst_39 = arith.constant dense<0xFF800000> : vector<8xf32>
    %80 = vector.multi_reduction <maximumf>, %79, %cst_39 [1] : vector<8x8xf32> to vector<8xf32>
    %81 = vector.shape_cast %80 : vector<8xf32> to vector<8x1xf32>
    %82 = vector.broadcast %81 : vector<8x1xf32> to vector<8x8xf32>
    %83 = arith.subf %79, %82 : vector<8x8xf32>
    %84 = math.exp %83 : vector<8x8xf32>
    %cst_40 = arith.constant dense<0.000000e+00> : vector<8xf32>
    %85 = vector.multi_reduction <add>, %84, %cst_40 [1] : vector<8x8xf32> to vector<8xf32>
    %86 = vector.shape_cast %85 : vector<8xf32> to vector<8x1xf32>
    %87 = tpu.reciprocal %86 {approx = true} : vector<8x1xf32> -> vector<8x1xf32>
    %88 = vector.broadcast %87 : vector<8x1xf32> to vector<8x8xf32>
    %89 = arith.mulf %84, %88 : vector<8x8xf32>
    %90 = arith.truncf %89 : vector<8x8xf32> to vector<8x8xbf16>
    %cst_41 = arith.constant dense<0.000000e+00> : vector<8x8xf32>
    %91 = tpu.matmul %90, %76, %cst_41 {dimension_numbers = #tpu.dot_dimension_numbers<[1], [0], [0], [1], [0, 0, 1, 1], [], []>} : vector<8x8xbf16>, vector<8x8xbf16>, vector<8x8xf32> -> vector<8x8xf32>
    %92 = vector.extract_strided_slice %35 {offsets = [0, 24], sizes = [8, 8], strides = [1, 1]} : vector<8x32xbf16> to vector<8x8xbf16>
    %93 = vector.extract_strided_slice %36 {offsets = [0, 24], sizes = [8, 8], strides = [1, 1]} : vector<8x32xbf16> to vector<8x8xbf16>
    %94 = vector.extract_strided_slice %37 {offsets = [0, 24], sizes = [8, 8], strides = [1, 1]} : vector<8x32xbf16> to vector<8x8xbf16>
    %cst_42 = arith.constant dense<0.000000e+00> : vector<8x8xf32>
    %95 = tpu.matmul %92, %93, %cst_42 {dimension_numbers = #tpu.dot_dimension_numbers<[1], [1], [0], [0], [0, 0, 1, 0], [], []>} : vector<8x8xbf16>, vector<8x8xbf16>, vector<8x8xf32> -> vector<8x8xf32>
    %96 = vector.broadcast %8 : vector<1x8xf32> to vector<8x8xf32>
    %97 = arith.addf %95, %96 : vector<8x8xf32>
    %cst_43 = arith.constant dense<0xFF800000> : vector<8xf32>
    %98 = vector.multi_reduction <maximumf>, %97, %cst_43 [1] : vector<8x8xf32> to vector<8xf32>
    %99 = vector.shape_cast %98 : vector<8xf32> to vector<8x1xf32>
    %100 = vector.broadcast %99 : vector<8x1xf32> to vector<8x8xf32>
    %101 = arith.subf %97, %100 : vector<8x8xf32>
    %102 = math.exp %101 : vector<8x8xf32>
    %cst_44 = arith.constant dense<0.000000e+00> : vector<8xf32>
    %103 = vector.multi_reduction <add>, %102, %cst_44 [1] : vector<8x8xf32> to vector<8xf32>
    %104 = vector.shape_cast %103 : vector<8xf32> to vector<8x1xf32>
    %105 = tpu.reciprocal %104 {approx = true} : vector<8x1xf32> -> vector<8x1xf32>
    %106 = vector.broadcast %105 : vector<8x1xf32> to vector<8x8xf32>
    %107 = arith.mulf %102, %106 : vector<8x8xf32>
    %108 = arith.truncf %107 : vector<8x8xf32> to vector<8x8xbf16>
    %cst_45 = arith.constant dense<0.000000e+00> : vector<8x8xf32>
    %109 = tpu.matmul %108, %94, %cst_45 {dimension_numbers = #tpu.dot_dimension_numbers<[1], [0], [0], [1], [0, 0, 1, 1], [], []>} : vector<8x8xbf16>, vector<8x8xbf16>, vector<8x8xf32> -> vector<8x8xf32>
    %110 = tpu.concatenate %55, %73, %91, %109 in 1 : vector<8x8xf32>, vector<8x8xf32>, vector<8x8xf32>, vector<8x8xf32> -> vector<8x32xf32>
    %111 = arith.truncf %110 : vector<8x32xf32> to vector<8x32xbf16>
    %c0_46 = arith.constant 0 : index
    %c0_47 = arith.constant 0 : index
    %c0_48 = arith.constant 0 : index
    %112 = vector.load %arg11[%c0_46, %c0_47, %c0_48] : memref<1x32x32xbf16, #tpu.memory_space<vmem>>, vector<1x32x32xbf16>
    %113 = vector.shape_cast %112 : vector<1x32x32xbf16> to vector<32x32xbf16>
    %cst_49 = arith.constant dense<0.000000e+00> : vector<8x32xf32>
    %114 = tpu.matmul %111, %113, %cst_49 {dimension_numbers = #tpu.dot_dimension_numbers<[1], [0], [0], [1], [0, 0, 1, 1], [], []>} : vector<8x32xbf16>, vector<32x32xbf16>, vector<8x32xf32> -> vector<8x32xf32>
    %c0_50 = arith.constant 0 : index
    %c0_51 = arith.constant 0 : index
    %c0_52 = arith.constant 0 : index
    %115 = vector.load %arg12[%c0_50, %c0_51, %c0_52] : memref<1x1x32xf32, #tpu.memory_space<vmem>>, vector<1x1x32xf32>
    %116 = vector.shape_cast %115 : vector<1x1x32xf32> to vector<1x32xf32>
    %117 = vector.broadcast %116 : vector<1x32xf32> to vector<8x32xf32>
    %118 = arith.addf %114, %117 : vector<8x32xf32>
    %119 = arith.addf %4, %118 : vector<8x32xf32>
    %cst_53 = arith.constant dense<0.000000e+00> : vector<8xf32>
    %120 = vector.multi_reduction <add>, %119, %cst_53 [1] : vector<8x32xf32> to vector<8xf32>
    %121 = vector.shape_cast %120 : vector<8xf32> to vector<8x1xf32>
    %cst_54 = arith.constant 3.200000e+01 : f32
    %122 = vector.broadcast %cst_54 : f32 to vector<8x1xf32>
    %123 = arith.divf %121, %122 : vector<8x1xf32>
    %124 = vector.broadcast %123 : vector<8x1xf32> to vector<8x32xf32>
    %125 = arith.subf %119, %124 : vector<8x32xf32>
    %126 = arith.mulf %125, %125 : vector<8x32xf32>
    %cst_55 = arith.constant dense<0.000000e+00> : vector<8xf32>
    %127 = vector.multi_reduction <add>, %126, %cst_55 [1] : vector<8x32xf32> to vector<8xf32>
    %128 = vector.shape_cast %127 : vector<8xf32> to vector<8x1xf32>
    %cst_56 = arith.constant 3.200000e+01 : f32
    %129 = vector.broadcast %cst_56 : f32 to vector<8x1xf32>
    %130 = arith.divf %128, %129 : vector<8x1xf32>
    %131 = vector.broadcast %123 : vector<8x1xf32> to vector<8x32xf32>
    %132 = arith.subf %119, %131 : vector<8x32xf32>
    %cst_57 = arith.constant 9.99999974E-6 : f32
    %133 = vector.broadcast %cst_57 : f32 to vector<8x1xf32>
    %134 = arith.addf %130, %133 : vector<8x1xf32>
    %135 = math.rsqrt %134 : vector<8x1xf32>
    %136 = vector.broadcast %135 : vector<8x1xf32> to vector<8x32xf32>
    %137 = arith.mulf %132, %136 : vector<8x32xf32>
    %c0_58 = arith.constant 0 : index
    %c0_59 = arith.constant 0 : index
    %c0_60 = arith.constant 0 : index
    %138 = vector.load %arg17[%c0_58, %c0_59, %c0_60] : memref<1x1x32xf32, #tpu.memory_space<vmem>>, vector<1x1x32xf32>
    %139 = vector.shape_cast %138 : vector<1x1x32xf32> to vector<1x32xf32>
    %140 = vector.broadcast %139 : vector<1x32xf32> to vector<8x32xf32>
    %141 = arith.mulf %137, %140 : vector<8x32xf32>
    %c0_61 = arith.constant 0 : index
    %c0_62 = arith.constant 0 : index
    %c0_63 = arith.constant 0 : index
    %142 = vector.load %arg18[%c0_61, %c0_62, %c0_63] : memref<1x1x32xf32, #tpu.memory_space<vmem>>, vector<1x1x32xf32>
    %143 = vector.shape_cast %142 : vector<1x1x32xf32> to vector<1x32xf32>
    %144 = vector.broadcast %143 : vector<1x32xf32> to vector<8x32xf32>
    %145 = arith.addf %141, %144 : vector<8x32xf32>
    %146 = arith.truncf %145 : vector<8x32xf32> to vector<8x32xbf16>
    %c0_64 = arith.constant 0 : index
    %c0_65 = arith.constant 0 : index
    %c0_66 = arith.constant 0 : index
    %147 = vector.load %arg13[%c0_64, %c0_65, %c0_66] : memref<1x32x64xbf16, #tpu.memory_space<vmem>>, vector<1x32x64xbf16>
    %148 = vector.shape_cast %147 : vector<1x32x64xbf16> to vector<32x64xbf16>
    %cst_67 = arith.constant dense<0.000000e+00> : vector<8x64xf32>
    %149 = tpu.matmul %146, %148, %cst_67 {dimension_numbers = #tpu.dot_dimension_numbers<[1], [0], [0], [1], [0, 0, 1, 1], [], []>} : vector<8x32xbf16>, vector<32x64xbf16>, vector<8x64xf32> -> vector<8x64xf32>
    %c0_68 = arith.constant 0 : index
    %c0_69 = arith.constant 0 : index
    %c0_70 = arith.constant 0 : index
    %150 = vector.load %arg14[%c0_68, %c0_69, %c0_70] : memref<1x1x64xf32, #tpu.memory_space<vmem>>, vector<1x1x64xf32>
    %151 = vector.shape_cast %150 : vector<1x1x64xf32> to vector<1x64xf32>
    %152 = vector.broadcast %151 : vector<1x64xf32> to vector<8x64xf32>
    %153 = arith.addf %149, %152 : vector<8x64xf32>
    %cst_71 = arith.constant 0.000000e+00 : f32
    %154 = vector.broadcast %cst_71 : f32 to vector<8x64xf32>
    %155 = arith.maximumf %153, %154 : vector<8x64xf32>
    %156 = arith.truncf %155 : vector<8x64xf32> to vector<8x64xbf16>
    %c0_72 = arith.constant 0 : index
    %c0_73 = arith.constant 0 : index
    %c0_74 = arith.constant 0 : index
    %157 = vector.load %arg15[%c0_72, %c0_73, %c0_74] : memref<1x64x32xbf16, #tpu.memory_space<vmem>>, vector<1x64x32xbf16>
    %158 = vector.shape_cast %157 : vector<1x64x32xbf16> to vector<64x32xbf16>
    %cst_75 = arith.constant dense<0.000000e+00> : vector<8x32xf32>
    %159 = tpu.matmul %156, %158, %cst_75 {dimension_numbers = #tpu.dot_dimension_numbers<[1], [0], [0], [1], [0, 0, 1, 1], [], []>} : vector<8x64xbf16>, vector<64x32xbf16>, vector<8x32xf32> -> vector<8x32xf32>
    %c0_76 = arith.constant 0 : index
    %c0_77 = arith.constant 0 : index
    %c0_78 = arith.constant 0 : index
    %160 = vector.load %arg16[%c0_76, %c0_77, %c0_78] : memref<1x1x32xf32, #tpu.memory_space<vmem>>, vector<1x1x32xf32>
    %161 = vector.shape_cast %160 : vector<1x1x32xf32> to vector<1x32xf32>
    %162 = vector.broadcast %161 : vector<1x32xf32> to vector<8x32xf32>
    %163 = arith.addf %159, %162 : vector<8x32xf32>
    %164 = arith.addf %145, %163 : vector<8x32xf32>
    %cst_79 = arith.constant dense<0.000000e+00> : vector<8xf32>
    %165 = vector.multi_reduction <add>, %164, %cst_79 [1] : vector<8x32xf32> to vector<8xf32>
    %166 = vector.shape_cast %165 : vector<8xf32> to vector<8x1xf32>
    %cst_80 = arith.constant 3.200000e+01 : f32
    %167 = vector.broadcast %cst_80 : f32 to vector<8x1xf32>
    %168 = arith.divf %166, %167 : vector<8x1xf32>
    %169 = vector.broadcast %168 : vector<8x1xf32> to vector<8x32xf32>
    %170 = arith.subf %164, %169 : vector<8x32xf32>
    %171 = arith.mulf %170, %170 : vector<8x32xf32>
    %cst_81 = arith.constant dense<0.000000e+00> : vector<8xf32>
    %172 = vector.multi_reduction <add>, %171, %cst_81 [1] : vector<8x32xf32> to vector<8xf32>
    %173 = vector.shape_cast %172 : vector<8xf32> to vector<8x1xf32>
    %cst_82 = arith.constant 3.200000e+01 : f32
    %174 = vector.broadcast %cst_82 : f32 to vector<8x1xf32>
    %175 = arith.divf %173, %174 : vector<8x1xf32>
    %176 = vector.broadcast %168 : vector<8x1xf32> to vector<8x32xf32>
    %177 = arith.subf %164, %176 : vector<8x32xf32>
    %cst_83 = arith.constant 9.99999974E-6 : f32
    %178 = vector.broadcast %cst_83 : f32 to vector<8x1xf32>
    %179 = arith.addf %175, %178 : vector<8x1xf32>
    %180 = math.rsqrt %179 : vector<8x1xf32>
    %181 = vector.broadcast %180 : vector<8x1xf32> to vector<8x32xf32>
    %182 = arith.mulf %177, %181 : vector<8x32xf32>
    %c0_84 = arith.constant 0 : index
    %c0_85 = arith.constant 0 : index
    %c0_86 = arith.constant 0 : index
    %183 = vector.load %arg19[%c0_84, %c0_85, %c0_86] : memref<1x1x32xf32, #tpu.memory_space<vmem>>, vector<1x1x32xf32>
    %184 = vector.shape_cast %183 : vector<1x1x32xf32> to vector<1x32xf32>
    %185 = vector.broadcast %184 : vector<1x32xf32> to vector<8x32xf32>
    %186 = arith.mulf %182, %185 : vector<8x32xf32>
    %c0_87 = arith.constant 0 : index
    %c0_88 = arith.constant 0 : index
    %c0_89 = arith.constant 0 : index
    %187 = vector.load %arg20[%c0_87, %c0_88, %c0_89] : memref<1x1x32xf32, #tpu.memory_space<vmem>>, vector<1x1x32xf32>
    %188 = vector.shape_cast %187 : vector<1x1x32xf32> to vector<1x32xf32>
    %189 = vector.broadcast %188 : vector<1x32xf32> to vector<8x32xf32>
    %190 = arith.addf %186, %189 : vector<8x32xf32>
    %c0_90 = arith.constant 0 : index
    %c0_91 = arith.constant 0 : index
    %c0_92 = arith.constant 0 : index
    %191 = vector.load %arg21[%c0_90, %c0_91, %c0_92] : memref<1x8x32xf32, #tpu.memory_space<vmem>>, vector<1x8x32xf32>
    %192 = vector.shape_cast %191 : vector<1x8x32xf32> to vector<8x32xf32>
    %193 = vector.shape_cast %190 : vector<8x32xf32> to vector<1x8x32xf32>
    tpu.vector_store %arg21[%c0_90, %c0_91, %c0_92], %193 {strides = array<i32>} : memref<1x8x32xf32, #tpu.memory_space<vmem>>, vector<1x8x32xf32>,
    return
  }
  func.func @transform_0(%arg0: i32, %arg1: i32) -> (i32, i32, i32) {
    %c0_i32 = arith.constant 0 : i32
    %c0_i32_0 = arith.constant 0 : i32
    %c0_i32_1 = arith.constant 0 : i32
    return %arg0, %c0_i32, %c0_i32_0 : i32, i32, i32
  }
  func.func @transform_1(%arg0: i32, %arg1: i32) -> (i32, i32, i32) {
    %c0_i32 = arith.constant 0 : i32
    %c0_i32_0 = arith.constant 0 : i32
    %c0_i32_1 = arith.constant 0 : i32
    return %arg0, %c0_i32, %c0_i32_0 : i32, i32, i32
  }
  func.func @transform_2(%arg0: i32, %arg1: i32) -> (i32, i32, i32) {
    %c0_i32 = arith.constant 0 : i32
    %c0_i32_0 = arith.constant 0 : i32
    %c0_i32_1 = arith.constant 0 : i32
    return %arg0, %c0_i32, %c0_i32_0 : i32, i32, i32
  }
  func.func @transform_3(%arg0: i32, %arg1: i32) -> (i32, i32, i32) {
    %c0_i32 = arith.constant 0 : i32
    %c0_i32_0 = arith.constant 0 : i32
    %c0_i32_1 = arith.constant 0 : i32
    return %arg1, %c0_i32, %c0_i32_0 : i32, i32, i32
  }
  func.func @transform_4(%arg0: i32, %arg1: i32) -> (i32, i32, i32) {
    %c0_i32 = arith.constant 0 : i32
    %c0_i32_0 = arith.constant 0 : i32
    %c0_i32_1 = arith.constant 0 : i32
    return %arg1, %c0_i32, %c0_i32_0 : i32, i32, i32
  }
  func.func @transform_5(%arg0: i32, %arg1: i32) -> (i32, i32, i32) {
    %c0_i32 = arith.constant 0 : i32
    %c0_i32_0 = arith.constant 0 : i32
    %c0_i32_1 = arith.constant 0 : i32
    return %arg1, %c0_i32, %c0_i32_0 : i32, i32, i32
  }
  func.func @transform_6(%arg0: i32, %arg1: i32) -> (i32, i32, i32) {
    %c0_i32 = arith.constant 0 : i32
    %c0_i32_0 = arith.constant 0 : i32
    %c0_i32_1 = arith.constant 0 : i32
    return %arg1, %c0_i32, %c0_i32_0 : i32, i32, i32
  }
  func.func @transform_7(%arg0: i32, %arg1: i32) -> (i32, i32, i32) {
    %c0_i32 = arith.constant 0 : i32
    %c0_i32_0 = arith.constant 0 : i32
    %c0_i32_1 = arith.constant 0 : i32
    return %arg1, %c0_i32, %c0_i32_0 : i32, i32, i32
  }
  func.func @transform_8(%arg0: i32, %arg1: i32) -> (i32, i32, i32) {
    %c0_i32 = arith.constant 0 : i32
    %c0_i32_0 = arith.constant 0 : i32
    %c0_i32_1 = arith.constant 0 : i32
    return %arg1, %c0_i32, %c0_i32_0 : i32, i32, i32
  }
  func.func @transform_9(%arg0: i32, %arg1: i32) -> (i32, i32, i32) {
    %c0_i32 = arith.constant 0 : i32
    %c0_i32_0 = arith.constant 0 : i32
    %c0_i32_1 = arith.constant 0 : i32
    return %arg1, %c0_i32, %c0_i32_0 : i32, i32, i32
  }
  func.func @transform_10(%arg0: i32, %arg1: i32) -> (i32, i32, i32) {
    %c0_i32 = arith.constant 0 : i32
    %c0_i32_0 = arith.constant 0 : i32
    %c0_i32_1 = arith.constant 0 : i32
    return %arg1, %c0_i32, %c0_i32_0 : i32, i32, i32
  }
  func.func @transform_11(%arg0: i32, %arg1: i32) -> (i32, i32, i32) {
    %c0_i32 = arith.constant 0 : i32
    %c0_i32_0 = arith.constant 0 : i32
    %c0_i32_1 = arith.constant 0 : i32
    return %arg1, %c0_i32, %c0_i32_0 : i32, i32, i32
  }
  func.func @transform_12(%arg0: i32, %arg1: i32) -> (i32, i32, i32) {
    %c0_i32 = arith.constant 0 : i32
    %c0_i32_0 = arith.constant 0 : i32
    %c0_i32_1 = arith.constant 0 : i32
    return %arg1, %c0_i32, %c0_i32_0 : i32, i32, i32
  }
  func.func @transform_13(%arg0: i32, %arg1: i32) -> (i32, i32, i32) {
    %c0_i32 = arith.constant 0 : i32
    %c0_i32_0 = arith.constant 0 : i32
    %c0_i32_1 = arith.constant 0 : i32
    return %arg1, %c0_i32, %c0_i32_0 : i32, i32, i32
  }
  func.func @transform_14(%arg0: i32, %arg1: i32) -> (i32, i32, i32) {
    %c0_i32 = arith.constant 0 : i32
    %c0_i32_0 = arith.constant 0 : i32
    %c0_i32_1 = arith.constant 0 : i32
    return %arg1, %c0_i32, %c0_i32_0 : i32, i32, i32
  }
  func.func @transform_15(%arg0: i32, %arg1: i32) -> (i32, i32, i32) {
    %c0_i32 = arith.constant 0 : i32
    %c0_i32_0 = arith.constant 0 : i32
    %c0_i32_1 = arith.constant 0 : i32
    return %arg1, %c0_i32, %c0_i32_0 : i32, i32, i32
  }
  func.func @transform_16(%arg0: i32, %arg1: i32) -> (i32, i32, i32) {
    %c0_i32 = arith.constant 0 : i32
    %c0_i32_0 = arith.constant 0 : i32
    %c0_i32_1 = arith.constant 0 : i32
    return %arg1, %c0_i32, %c0_i32_0 : i32, i32, i32
  }
  func.func @transform_17(%arg0: i32, %arg1: i32) -> (i32, i32, i32) {
    %c0_i32 = arith.constant 0 : i32
    %c0_i32_0 = arith.constant 0 : i32
    %c0_i32_1 = arith.constant 0 : i32
    return %arg1, %c0_i32, %c0_i32_0 : i32, i32, i32
  }
  func.func @transform_18(%arg0: i32, %arg1: i32) -> (i32, i32, i32) {
    %c0_i32 = arith.constant 0 : i32
    %c0_i32_0 = arith.constant 0 : i32
    %c0_i32_1 = arith.constant 0 : i32
    return %arg1, %c0_i32, %c0_i32_0 : i32, i32, i32
  }
  func.func @transform_19(%arg0: i32, %arg1: i32) -> (i32, i32, i32) {
    %c0_i32 = arith.constant 0 : i32
    %c0_i32_0 = arith.constant 0 : i32
    %c0_i32_1 = arith.constant 0 : i32
    return %arg0, %c0_i32, %c0_i32_0 : i32, i32, i32
  }
}

</mosaic_0001>

<bundles_post_ra>
// kernel: tpu_custom_call.1
= control target key start
LH: loop header
LB: loop body
LE: loop exit
PB: predicated region body
PF: predicated region fallthrough
CT: control target
= control target key end

     0   :  { %s3662_s0 = inlined_call_operand.hbm [shape: f32[2,8,32], index: 0, kind: input, shape index: {}]   ;;  %s3663_s1 = inlined_call_operand.hbm [shape: f32[2,8,32], index: 1, kind: input, shape index: {}]   ;;  %s3664_s2 = inlined_call_operand.vmem [shape: f32[2,1,8], index: 2, kind: input, shape index: {}]   ;;  %s3665_s3 = inlined_call_operand.vmem [shape: bf16[2,32,32], index: 3, kind: input, shape index: {}]   ;;  %s3666_s4 = inlined_call_operand.vmem [shape: bf16[2,32,32], index: 4, kind: input, shape index: {}]   ;;  %s3667_s5 = inlined_call_operand.vmem [shape: bf16[2,32,32], index: 5, kind: input, shape index: {}]   ;;  %s3668_s6 = inlined_call_operand.vmem [shape: f32[2,1,32], index: 6, kind: input, shape index: {}]   ;;  %s3669_s7 = inlined_call_operand.vmem [shape: f32[2,1,32], index: 7, kind: input, shape index: {}]   ;;  %s3670_s8 = inlined_call_operand.vmem [shape: f32[2,1,32], index: 8, kind: input, shape index: {}]   ;;  %s3671_s9 = inlined_call_operand.hbm [shape: bf16[2,32,32], index: 9, kind: input, shape index: {}]   ;;  %s3672_s10 = inlined_call_operand.vmem [shape: f32[2,1,32], index: 10, kind: input, shape index: {}]   ;;  %s3673_s11 = inlined_call_operand.hbm [shape: bf16[2,32,64], index: 11, kind: input, shape index: {}]   ;;  %s3674_s12 = inlined_call_operand.vmem [shape: f32[2,1,64], index: 12, kind: input, shape index: {}]   ;;  %s3675_s13 = inlined_call_operand.vmem [shape: bf16[2,64,32], index: 13, kind: input, shape index: {}]   ;;  %s3676_s14 = inlined_call_operand.vmem [shape: f32[2,1,32], index: 14, kind: input, shape index: {}]   ;;  %s3677_s15 = inlined_call_operand.vmem [shape: f32[2,1,32], index: 15, kind: input, shape index: {}]   ;;  %s3678_s16 = inlined_call_operand.vmem [shape: f32[2,1,32], index: 16, kind: input, shape index: {}]   ;;  %s3679_s17 = inlined_call_operand.vmem [shape: f32[2,1,32], index: 17, kind: input, shape index: {}]   ;;  %s3680_s18 = inlined_call_operand.vmem [shape: f32[2,1,32], index: 18, kind: input, shape index: {}]   ;;  %s3681_s19 = inlined_call_operand.hbm [shape: f32[2,8,32], index: 19, kind: output, shape index: {}]  }
   0x1   :  { %3709 = sst [smem:[#allocation32_spill]] %s3662_s0 }
   0x2   :  { %3710 = sst [smem:[#allocation33_spill]] %s3663_s1 }
   0x3   :  { %3711 = sst [smem:[#allocation34_spill]] %s3664_s2 }
   0x4   :  { %3712 = sst [smem:[#allocation35_spill]] %s3665_s3 }
   0x5   :  { %3713 = sst [smem:[#allocation36_spill]] %s3666_s4 }
   0x6   :  { %3714 = sst [smem:[#allocation37_spill]] %s3667_s5 }
   0x7   :  { %3715 = sst [smem:[#allocation38_spill]] %s3669_s7 }
   0x8   :  { %3716 = sst [smem:[#allocation39_spill]] %s3670_s8 }
   0x9   :  { %3717 = sst [smem:[#allocation40_spill]] %s3671_s9 }
   0xa   :  { %3718 = sst [smem:[#allocation41_spill]] %s3672_s10 }
   0xb   :  { %3719 = sst [smem:[#allocation42_spill]] %s3673_s11 }
   0xc   :  { %3720 = sst [smem:[#allocation43_spill]] %s3674_s12 }
   0xd   :  { %3721 = sst [smem:[#allocation44_spill]] %s3675_s13 }
   0xe   :  { %3722 = sst [smem:[#allocation45_spill]] %s3676_s14 }
   0xf   :  { %3723 = sst [smem:[#allocation46_spill]] %s3677_s15 }
  0x10   :  { %3724 = sst [smem:[#allocation47_spill]] %s3678_s16 }
  0x11   :  { %3725 = sst [smem:[#allocation48_spill]] %s3679_s17 }
  0x12   :  { %3726 = sst [smem:[#allocation49_spill]] %s3680_s18 }
  0x13   :  { %3727 = sst [smem:[#allocation50_spill]] %s3681_s19 }
  0x14   :  { %24 = vsyncpa [#allocation3], 0 }
  0x15   :  { %26 = vsyncpa [#allocation3 + $0x1], 0 }
  0x16   :  { %27 = vsyncpa [#allocation6], 0 }
  0x17   :  { %29 = vsyncpa [#allocation6 + $0x1], 0 }
  0x18   :  { %30 = vsyncpa [#allocation9], 0 }
  0x19   :  { %32 = vsyncpa [#allocation9 + $0x1], 0 }
  0x1a   :  { %33 = vsyncpa [#allocation4], 0 }
  0x1b   :  { %35 = vsyncpa [#allocation4 + $0x1], 0  ;;  %s2989_s0 = smov 0   ;;  %s2991_s30 = smov 0  }
  0x1c   :  { %s2993_s20 = smov 0   ;;  %s2995_s21 = smov 0  }
  0x1d   :  { %s2997_s1 = smov 0   ;;  %s2999_s22 = smov 0  }
  0x1e   :  { %s3001_s2 = smov 0   ;;  %s3003_s23 = smov 0  }
  0x1f   :  { %s3005_s24 = smov 0   ;;  %s3007_s25 = smov 0  }
  0x20   :  { %s3009_s3 = smov 0  }
  0x21 LB: > { %3728 = sst [smem:[#allocation16_spill]] %s2836_s30  ;;  %s3045_s26 = sadd.s32 4294967295, %s2872_s3   ;;  %s2872_s3 = sphi %s3009_s3, %s41_s3   ;;  %s2868_s25 = sphi %s3007_s25, %s3818_s25   ;;  %s2864_s24 = sphi %s3005_s24, %s3817_s24   ;;  %s2860_s23 = sphi %s3003_s23, %s3816_s23   ;;  %s2856_s2 = sphi %s3001_s2, %s3815_s2   ;;  %s2852_s22 = sphi %s2999_s22, %s3814_s22   ;;  %s2848_s1 = sphi %s2997_s1, %s3813_s1   ;;  %s2844_s21 = sphi %s2995_s21, %s3812_s21   ;;  %s2840_s20 = sphi %s2993_s20, %s3811_s20   ;;  %s2836_s30 = sphi %s2991_s30, %s3810_s30   ;;  %s2832_s0 = sphi %s2989_s0, %s3809_s0  }
  0x22   : > { %3729 = sst [smem:[#allocation17_spill]] %s2840_s20  ;;  %s2244_s27 = sadd.s32 4294967294, %s2872_s3  }
  0x23   : > { %3730 = sst [smem:[#allocation18_spill]] %s2844_s21  ;;  %s50_s28 = sadd.s32 1, %s2864_s24 }
  0x24   : > { %3731 = sst [smem:[#allocation19_spill]] %s2848_s1  ;;  %s53_s29 = sadd.s32 1, %s2868_s25 }
  0x25   : > { %3732 = sst [smem:[#allocation20_spill]] %s2852_s22  ;;  %p51_p0 = scmp.ge.s32.totalorder %s50_s28, 2 }
  0x26   : > { %3733 = sst [smem:[#allocation21_spill]] %s2860_s23  ;;  %s60_s19 = sadd.s32 1, %s2852_s22 }
  0x27   : > { %3734 = sst [smem:[#allocation22_spill]] %s2864_s24  ;;  %p67_p1 = scmp.ne.s32.totalorder %s2852_s22, %s2848_s1 }
  0x28   : > { %3735 = sst [smem:[#allocation23_spill]] %s2868_s25  ;;  %p68_p2 = scmp.eq.s32.totalorder %s2872_s3, 0 }
  0x29   : > { %3736 = sst [smem:[#allocation24_spill]] %s2872_s3  ;;  %s3820_s28 = smov (%p51_p0, %s50_s28), 0 }
  0x2a   : > { %3737 = sst [smem:[#allocation25_spill]] %s3820_s28  ;;  %s3822_s29 = smov (!%p51_p0, %s53_s29), %s2868_s25 }
  0x2b   : > { %p3062_p3 = por %p68_p2, %p67_p1  ;;  %p3686_p4 = scmp.ne.s32.totalorder %s2848_s1, %s2844_s21 }
  0x2c   : > { %p55_p5 = scmp.ge.s32.totalorder %s3822_s29, 2  ;;  %p74_p6 = scmp.eq.s32.totalorder %s3045_s26, 0 }
  0x2d   : > { %s291_s17 = ssub.s32 %s2864_s24, %s3820_s28  ;;  %s294_s16 = sadd.s32 1, %s2840_s20 }
  0x2e   : > { %s3824_s29 = smov (%p55_p5, %s3822_s29), 0  ;;  %p3079_p7 = por %p74_p6, %p3686_p4 }
  0x2f   : > { %3739 = sst [smem:[#allocation26_spill]] %s3824_s29  ;;  %p292_p8 = scmp.eq.s32.totalorder %s291_s17, 0 }
  0x30   : > { %s3740_s15 = scalar_select %p3079_p7, 1, 0 }
  0x31   : > { %s57_s14 = ssub.s32 %s2868_s25, %s3824_s29  ;;  %p301_p9 = scmp.ne.s32.totalorder %s2840_s20, %s2836_s30 }
  0x32   : > { %p58_p10 = scmp.eq.s32.totalorder %s57_s14, 0  ;;  %p307_p11 = scmp.ne.s32.totalorder %s2836_s30, %s2832_s0 }
  0x33   : > { %s3090_s28 = scalar_select %p292_p8, %s2840_s20, %s294_s16  }
  0x34   : > { %s3093_s13 = scalar_select %p58_p10, %s2852_s22, %s60_s19  }
  0x35   : > { %3741 = sst [smem:[#allocation27_spill]] %s3090_s28  ;;  %p3097_p12 = por %p301_p9, %p68_p2 }
  0x36   : > { %3742 = sst [smem:[#allocation28_spill]] %s3093_s13  ;;  %p3103_p13 = por %p307_p11, %p74_p6 }
  0x37   : > { %p565_p0 = scmp.eq.s32.totalorder %s3045_s26, 3  ;;  %p571_p5 = scmp.eq.s32.totalorder %s2244_s27, 3 }
  0x38   : > { %s3744_s17 = scalar_select %p3103_p13, 1, 0 }
  0x39   : > { %p2484_p4 = scmp.lt.s32.totalorder %s2872_s3, 4  ;;  %p3112_p7 = por %p565_p0, %p67_p1 }
  0x3a   : > { %p3747_p8 = scmp.ne.s32.totalorder %s2848_s1, %s2844_s21  ;;  %s3692_s19 = sand.u32 1, %s2852_s22  }
  0x3b   : > { %s3745_s14 = scalar_select %p3112_p7, 1, 0 }
  0x3c   : > { %p3119_p10 = por %p571_p5, %p3747_p8  ;;  %s3694_s0 = sshll.u32 %s2868_s25, 7 }
  0x3d   : > { %3746 = sst [smem:[#allocation29_spill]] %s3745_s14  ;;  %s3127_s29 = sshll.u32 %s3692_s19, 3 }
  0x3e   : > { %s3748_s16 = scalar_select %p3119_p10, 1, 0 }
  0x3f   : > { %p3131_p2 = pnand %p2484_p4, %p3062_p3  ;;  %s609_s13 = sand.u32 1, %s2872_s3  }
  0x40   : > { %3749 = sst [smem:[#allocation30_spill]] %s3748_s16  ;;  %s613_s19 = scalar_lea.vmem [#allocation5], %s3127_s29 }
  0x41   : > { %s3751_s14 = sld [smem:[#allocation33_spill]]  ;;  %s620_s18 = sshll.u32 %s613_s19, 4  ;;  %s3144_s18 = int_to_ptr.vmem [resolvable:$true] %s620_s18 }
  0x42   : > { %p3148_p1 = pnand %p2484_p4, %p3097_p12  ;;  %s3152_s8 = scalar_lea.sflag [#allocation6], %s609_s13 }
  0x43   : > { %p2620_p6 = pneg %p3131_p2 }
  0x47   : > { %s3141_s10 = scalar_lea.hbm %s3751_s14, %s3694_s0  ;;  %s2623_s19 = scalar_lea.hbm %s3751_s14, 256 }
  0x48   : > { %s2618_s7 = scalar_lea.hbm %s3141_s10, 128  ;;  %p2624_p4 = scmp.lt.u32.totalorder %s3141_s10, %s3751_s14 }
  0x49   : > { %p2619_p3 = scmp.ne.s32.totalorder %s3141_s10, %s2618_s7  ;;  %p2625_p12 = scmp.lt.u32.totalorder %s2623_s19, %s2618_s7 }
  0x4a   : > { %p2627_p5 = scmp.lt.u32.totalorder %s2618_s7, %s3141_s10 }
  0x4b   : > { %p2621_p9 = pnand %p2620_p6, %p2619_p3  ;;  %p2626_p0 = por %p2625_p12, %p2624_p4 }
  0x4d   : > { %p2622_p11 = pneg %p2621_p9  ;;  %p2628_p8 = por %p2627_p5, %p2626_p0 }
  0x4f   : > { %p2629_p10 = pnand %p2628_p8, %p2622_p11 }
  0x51   : > { %2632 = shalt.err (!%p2629_p10)
}
  0x52   : > { %s2633_s13 = scalar_lea.vmem %s3144_s18, 128  ;;  %s2874_s21 = smov [#allocation5]  }
  0x53   : > { %p2634_p3 = scmp.ne.s32.totalorder %s3144_s18, %s2633_s13  ;;  %s2638_s28 = sshll.u32 %s2874_s21, 4  ;;  %s2639_s28 = int_to_ptr.vmem [resolvable:$false] %s2638_s28 }
  0x54   : > { %s2640_s0 = scalar_lea.vmem %s2639_s28, 256  ;;  %p2641_p13 = scmp.lt.s32.totalorder %s3144_s18, %s2639_s28 }
  0x55   : > { %p2636_p9 = pnand %p2634_p3, %p2620_p6  ;;  %p2642_p4 = scmp.lt.s32.totalorder %s2640_s0, %s2633_s13 }
  0x57   : > { %p2637_p7 = pneg %p2636_p9  ;;  %p2643_p12 = por %p2642_p4, %p2641_p13 }
  0x59   : > { %p2644_p0 = pnand %p2643_p12, %p2637_p7 }
  0x5b   : > { %2647 = shalt.err (!%p2644_p0)
}
  0x5c   : > { %2473 = dma.hbm_to_vmem [thread:$0]  (!%p3131_p2), %s3141_s10, 128, %s3144_s18, %s3152_s8  }
  0x5d   : > { %p2257_p10 = scmp.ge.s32.totalorder %s2872_s3, 1  ;;  %p765_p11 = scmp.lt.s32.totalorder %s2872_s3, 5 }
  0x5e   : > { %s3754_s19 = sshll.u32 %s2868_s25, 7  ;;  %s3755_s21 = sld [smem:[#allocation32_spill]] }
  0x5f   : > { %p3182_p5 = pnand %p2257_p10, %p765_p11  ;;  %s595_s14 = scalar_lea.vmem [#allocation2], %s3127_s29 }
  0x60   : > { %s602_s5 = sshll.u32 %s595_s14, 4  ;;  %s677_s10 = sand.u32 1, %s2840_s20   ;;  %s3194_s5 = int_to_ptr.vmem [resolvable:$true] %s602_s5 }
  0x61   : > { %s3753_s7 = scalar_select %p3182_p5, 1, 0 }
  0x62   : > { %s3757_s18 = sand.u32 1, %s2852_s22  }
  0x63   : > { %s592_s3 = scalar_lea.sflag [#allocation3], %s3757_s18 }
  0x64   : > { %s3756_s28 = smov %s3755_s21  ;;  %s3191_s0 = scalar_lea.hbm %s3755_s21, %s3754_s19 }
  0x65   : > { %s2648_s4 = scalar_lea.hbm %s3191_s0, 128  ;;  %s2653_s13 = scalar_lea.hbm %s3756_s28, 256 }
  0x66   : > { %p2649_p7 = scmp.ne.s32.totalorder %s3191_s0, %s2648_s4  ;;  %p2654_p3 = scmp.lt.u32.totalorder %s3191_s0, %s3756_s28 }
  0x67   : > { %p2655_p9 = scmp.lt.u32.totalorder %s2653_s13, %s2648_s4  ;;  %p2657_p12 = scmp.lt.u32.totalorder %s2648_s4, %s3191_s0 }
  0x68   : > { %p2651_p13 = pnand %p2649_p7, %p2620_p6 }
  0x69   : > { %p2656_p4 = por %p2655_p9, %p2654_p3 }
  0x6a   : > { %p2652_p8 = pneg %p2651_p13 }
  0x6b   : > { %p2658_p0 = por %p2657_p12, %p2656_p4 }
  0x6d   : > { %p2659_p10 = pnand %p2658_p0, %p2652_p8 }
  0x6f   : > { %2662 = shalt.err (!%p2659_p10)
}
  0x70   : > { %s2663_s29 = scalar_lea.vmem %s3194_s5, 128  ;;  %s2875_s14 = smov [#allocation2]  }
  0x71   : > { %p2664_p11 = scmp.ne.s32.totalorder %s3194_s5, %s2663_s29  ;;  %s2668_s18 = sshll.u32 %s2875_s14, 4  ;;  %s2669_s18 = int_to_ptr.vmem [resolvable:$false] %s2668_s18 }
  0x72   : > { %s2670_s25 = scalar_lea.vmem %s2669_s18, 256  ;;  %p2671_p5 = scmp.lt.s32.totalorder %s3194_s5, %s2669_s18 }
  0x73   : > { %p2666_p7 = pnand %p2664_p11, %p2620_p6  ;;  %p2672_p3 = scmp.lt.s32.totalorder %s2670_s25, %s2663_s29 }
  0x75   : > { %p2667_p13 = pneg %p2666_p7  ;;  %p2673_p9 = por %p2672_p3, %p2671_p5 }
  0x77   : > { %p2674_p4 = pnand %p2673_p9, %p2667_p13 }
  0x79   : > { %2677 = shalt.err (!%p2674_p4)
}
  0x7a   : > { %2470 = dma.hbm_to_vmem [thread:$0]  (!%p3131_p2), %s3191_s0, 128, %s3194_s5, %s592_s3  }
  0x7b   : > { %s3224_s4 = sshll.u32 %s677_s10, 4  ;;  %s2315_s12 = sshll.u32 %s2864_s24, 8 }
  0x7c   : > { %s3758_s9 = sld [smem:[#allocation40_spill]]  ;;  %s679_s27 = scalar_lea.vmem [#allocation7], %s3224_s4 }
  0x7d   : > { %s686_s29 = sshll.u32 %s679_s27, 4  ;;  %p2680_p6 = pneg %p3148_p1  ;;  %s3235_s29 = int_to_ptr.vmem [resolvable:$true] %s686_s29 }
  0x82   : > { %s3232_s21 = scalar_lea.hbm %s3758_s9, %s2315_s12  ;;  %s2683_s14 = scalar_lea.hbm %s3758_s9, 512 }
  0x83   : > { %s2678_s5 = scalar_lea.hbm %s3232_s21, 256  ;;  %p2684_p12 = scmp.lt.u32.totalorder %s3232_s21, %s3758_s9 }
  0x84   : > { %p2679_p2 = scmp.ne.s32.totalorder %s3232_s21, %s2678_s5  ;;  %p2685_p0 = scmp.lt.u32.totalorder %s2683_s14, %s2678_s5 }
  0x85   : > { %p2687_p11 = scmp.lt.u32.totalorder %s2678_s5, %s3232_s21 }
  0x86   : > { %p2681_p5 = pnand %p2680_p6, %p2679_p2  ;;  %p2686_p10 = por %p2685_p0, %p2684_p12 }
  0x88   : > { %p2682_p8 = pneg %p2681_p5  ;;  %p2688_p7 = por %p2687_p11, %p2686_p10 }
  0x8a   : > { %p2689_p13 = pnand %p2688_p7, %p2682_p8 }
  0x8c   : > { %2692 = shalt.err (!%p2689_p13)
}
  0x8d   : > { %s2693_s19 = scalar_lea.vmem %s3235_s29, 256  ;;  %s2876_s13 = smov [#allocation7]  }
  0x8e   : > { %p2694_p3 = scmp.ne.s32.totalorder %s3235_s29, %s2693_s19  ;;  %s2698_s27 = sshll.u32 %s2876_s13, 4  ;;  %s2699_s27 = int_to_ptr.vmem [resolvable:$false] %s2698_s27 }
  0x8f   : > { %s2700_s3 = scalar_lea.vmem %s2699_s27, 512  ;;  %p2701_p2 = scmp.lt.s32.totalorder %s3235_s29, %s2699_s27 }
  0x90   : > { %p2696_p9 = pnand %p2694_p3, %p2680_p6  ;;  %p2702_p5 = scmp.lt.s32.totalorder %s2700_s3, %s2693_s19 }
  0x92   : > { %p2697_p4 = pneg %p2696_p9  ;;  %p2703_p12 = por %p2702_p5, %p2701_p2 }
  0x94   : > { %p2704_p0 = pnand %p2703_p12, %p2697_p4 }
  0x96   : > { %2707 = shalt.err (!%p2704_p0)
}
  0x97   : > { %s2877_s5 = smov 64   ;;  %s2878_s0 = smov 4  }
  0x98   : > { %2476 = dma.hbm_to_vmem [thread:$0]  (!%p3148_p1), %s3232_s21, 256, %s3235_s29, %s3152_s8, %s2877_s5, %s2877_s5, %s2878_s0  }
  0x99   : > { %s3759_s11 = sld [smem:[#allocation42_spill]]  ;;  %s706_s19 = scalar_lea.vmem [#allocation8], %s3224_s4 }
  0x9a   : > { %s713_s13 = sshll.u32 %s706_s19, 4  ;;  %s3278_s27 = scalar_lea.sflag [#allocation9], %s677_s10  ;;  %s3274_s13 = int_to_ptr.vmem [resolvable:$true] %s713_s13 }
  0x9f   : > { %s3271_s25 = scalar_lea.hbm %s3759_s11, %s2315_s12  ;;  %s2713_s21 = scalar_lea.hbm %s3759_s11, 512 }
  0xa0   : > { %s2708_s3 = scalar_lea.hbm %s3271_s25, 256  ;;  %p2714_p7 = scmp.lt.u32.totalorder %s3271_s25, %s3759_s11 }
  0xa1   : > { %p2709_p8 = scmp.ne.s32.totalorder %s3271_s25, %s2708_s3  ;;  %p2715_p13 = scmp.lt.u32.totalorder %s2713_s21, %s2708_s3 }
  0xa2   : > { %p2717_p9 = scmp.lt.u32.totalorder %s2708_s3, %s3271_s25 }
  0xa3   : > { %p2711_p10 = pnand %p2709_p8, %p2680_p6  ;;  %p2716_p3 = por %p2715_p13, %p2714_p7 }
  0xa5   : > { %p2712_p11 = pneg %p2711_p10  ;;  %p2718_p4 = por %p2717_p9, %p2716_p3 }
  0xa7   : > { %p2719_p2 = pnand %p2718_p4, %p2712_p11 }
  0xa9   : > { %2722 = shalt.err (!%p2719_p2)
}
  0xaa   : > { %s2723_s10 = scalar_lea.vmem %s3274_s13, 256  ;;  %s2879_s4 = smov [#allocation8]  }
  0xab   : > { %p2724_p5 = scmp.ne.s32.totalorder %s3274_s13, %s2723_s10  ;;  %s2728_s18 = sshll.u32 %s2879_s4, 4  ;;  %s2729_s18 = int_to_ptr.vmem [resolvable:$false] %s2728_s18 }
  0xac   : > { %s2730_s19 = scalar_lea.vmem %s2729_s18, 512  ;;  %p2731_p8 = scmp.lt.s32.totalorder %s3274_s13, %s2729_s18 }
  0xad   : > { %p2726_p12 = pnand %p2724_p5, %p2680_p6  ;;  %p2732_p10 = scmp.lt.s32.totalorder %s2730_s19, %s2723_s10 }
  0xaf   : > { %p2727_p0 = pneg %p2726_p12  ;;  %p2733_p7 = por %p2732_p10, %p2731_p8 }
  0xb1   : > { %p2734_p13 = pnand %p2733_p7, %p2727_p0 }
  0xb3   : > { %2737 = shalt.err (!%p2734_p13)
}
  0xb4   : > { %2479 = dma.hbm_to_vmem [thread:$0]  (!%p3148_p1), %s3271_s25, 256, %s3274_s13, %s3278_s27, %s2877_s5, %s2877_s5, %s2878_s0  }
  0xb5   : > { %p3760_p6 = scmp.ne.s32.totalorder %s3753_s7, 0 }
  0xb7   : > { %769 = sbr.rel (%p3760_p6) target bundleno = 2739 (0xab3), region = 96 }
  0xbe   : > { %s3310_s3 = sand.u32 1, %s2848_s1   ;;  %p3762_p11 = scmp.ne.s32.totalorder %s3740_s15, 0 }
  0xbf   : > { %3761 = sst [smem:[#allocation31_spill]] %s3310_s3  ;;  %s3313_s8 = sshll.u32 %s3310_s3, 3 }
  0xc0   : > { %s772_s16 = scalar_lea.sflag [#allocation3], %s3310_s3 }
  0xc1   : > { %2811 = dma.done.wait (%p3762_p11), %s772_s16, 128  }
  0xc2   : > { %2813 = vsyncadd (%p3762_p11), %s772_s16, 4294967168  ;;  %s780_s7 = sand.u32 1, %s3045_s26  }
  0xc3   : > { %s781_s5 = scalar_lea.sflag [#allocation6], %s780_s7 }
  0xc4   : > { %2815 = dma.done.wait (%p3762_p11), %s781_s5, 128  }
  0xc5   : > { %2817 = vsyncadd (%p3762_p11), %s781_s5, 4294967168  ;;  %s791_s25 = sand.u32 1, %s2836_s30   ;;  %p3763_p1 = scmp.ne.s32.totalorder %s3744_s17, 0 }
  0xc6   : > { %s3328_s13 = sshll.u32 %s791_s25, 4 }
  0xc7   : > { %2819 = dma.done.wait (%p3763_p1), %s781_s5, 256  }
  0xc8   : > { %2821 = vsyncadd (%p3763_p1), %s781_s5, 4294967040  ;;  %s799_s26 = scalar_lea.sflag [#allocation9], %s791_s25 }
  0xc9   : > { %2823 = dma.done.wait (%p3763_p1), %s799_s26, 256  }
  0xca   : > { %2825 = vsyncadd (%p3763_p1), %s799_s26, 4294967040  ;;  %p925_p3 = scmp.lt.s32.totalorder %s2860_s23, 1  ;;  %p928_p9 = scmp.lt.s32.totalorder %s2856_s2, 1 }
  0xcb   : > { %s3765_s26 = sld [smem:[#allocation35_spill]]  ;;  %s3766_s27 = sld [smem:[#allocation36_spill]] }
  0xcc   : > { %s3343_s15 = scalar_select %p925_p3, %s2860_s23, 1 }
  0xcd   : > { %s3346_s29 = scalar_select %p928_p9, %s2856_s2, 1 }
  0xce   : > { %s3767_s11 = sld [smem:[#allocation37_spill]]  ;;  %s3772_s12 = sld [smem:[#allocation44_spill]] }
  0xcf   : > { %s2317_s18 = sshll.u32 %s3346_s29, 4  ;;  %s2320_s3 = sshll.u32 %s3346_s29, 5 }
  0xd0   : > { %s3773_s17 = sld [smem:[#allocation45_spill]]  ;;  %s3774_s16 = sld [smem:[#allocation46_spill]] }
  0xd1   : > { %s3360_s14 = scalar_lea.vmem %s3765_s26, %s2317_s18  ;;  %s937_s0 = scalar_lea.vmem %s3766_s27, %s2317_s18 }
  0xd2   : > { %s3775_s26 = sld [smem:[#allocation47_spill]]  ;;  %s3776_s27 = sld [smem:[#allocation48_spill]] }
  0xd3   : > { %p2271_p4 = scmp.ne.s32.totalorder %s2856_s2, 0 }
  0xd4   : > { %s3368_s4 = scalar_lea.vmem %s3767_s11, %s2317_s18  ;;  %s3390_s18 = scalar_lea.vmem %s3772_s12, %s2320_s3  ;;  %vm984_vm0 = vcmask (!%p2271_p4), 261120  }
  0xd5   : > { %s3777_s3 = sld [smem:[#allocation49_spill]]  ;;  %s3413_s12 = scalar_lea.vmem [#allocation10], %s3313_s8 }
  0xd6   : > { %s965_s19 = scalar_lea.vmem %s3773_s17, %s3346_s29  ;;  %s968_s1 = scalar_lea.vmem %s3774_s16, %s3346_s29 }
  0xd7   : > { %982 = sbr.rel (%p2271_p4) target bundleno = 222 (0xde), region = 116  ;;  %s3778_s28 = scalar_lea.vmem (!%p2271_p4), [#allocation2], %s3313_s8 }
  0xd8   : > { %s971_s20 = scalar_lea.vmem %s3775_s26, %s3346_s29  ;;  %s974_s10 = scalar_lea.vmem %s3776_s27, %s3346_s29  ;;  %v983_v0 = vld [vmem:[%s3778_s28] sm:$0xff] (!%p2271_p4) }
  0xd9   : > { %985 = vst.msk [vmem:[%s3413_s12] sm:$0xff] (!%p2271_p4), %vm984_vm0, %v983_v0 }
  0xdb   : > { %s977_s11 = scalar_lea.vmem %s3777_s3, %s3346_s29 }
  0xde PF: > { %v2584_v1 = vld [vmem:[%s937_s0] sm:$0xff]   ;;  %v2880_v2 = vmov 0.0   ;;  %v2586_v4 = vld [vmem:[%s937_s0 + $0x8] sm:$0xff]   ;;  %vm2881_vm1 = vmmov 0   ;;  %s3779_s2 = scalar_lea.vmem [#allocation5], %s3313_s8  ;;  %vm1015_vm2 = vcmask 261120   ;;  %s3782_s7 = scalar_lea.vmem %s3668_s6, %s3346_s29 }
  0xdf   : > { %2365 = vmatprep.subr.bf16.mxu1 %v2880_v2  ;;  %2357 = vmatprep.subr.bf16.mxu0 %v2880_v2  ;;  %v2585_v3 = vld [vmem:[%s3360_s14] sm:$0xff]   ;;  %v2587_v5 = vld [vmem:[%s3360_s14 + $0x8] sm:$0xff]   ;;  %v987_v7 = vld [vmem:[%s3779_s2] sm:$0xff]  ;;  %s3780_s0 = sld [smem:[#allocation38_spill]]  ;;  %vm1198_vm3 = vcmask 64512   ;;  %s2882_s22 = smov 112  }
  0xe0   : > { %2366 = vmatpush3.bf16.msra.mxu1 %v2584_v1  ;;  %2369 = vmatprep.mubr.msk.bf16.mxu1 %vm2881_vm1, %v2880_v2  ;;  %v3428_v6 = vld [vmem:[%s3413_s12] sm:$0xff]  ;;  %s2883_s16 = smov 120   ;;  %s2884_s5 = smov 104   ;;  %vm1260_vm4 = vcmask 1043456   ;;  %vm1650_vm5 = vcmask 130048   ;;  %vm1652_vm6 = vcmask 195584  }
  0xe1   : > { %2358 = vmatpush3.bf16.msra.mxu0 %v2585_v3  ;;  %2367 = vmatprep.subr.bf16.mxu1 %v2880_v2  ;;  %v989_v8 = vadd.f32 %v987_v7, %v3428_v6  ;;  %v2272_v11 = vld [vmem:[%s3782_s7] ss:$0 sm:$0xff]  ;;  %v2589_v27 = vld [vmem:[%s3368_s4 + $0x8] sm:$0xff]   ;;  %v991_v28 = vpack.c.bf16 %v3428_v6, %v3428_v6  ;;  %s3783_s26 = sld [smem:[#allocation34_spill]]  ;;  %s3785_s9 = sld [smem:[#allocation39_spill]]  ;;  %vm1860_vm7 = vcmask 523264  }
  0xe2   : > { %2359 = vmatprep.subr.bf16.mxu0 %v2880_v2  ;;  %2361 = vmatprep.mubr.msk.bf16.mxu0 %vm2881_vm1, %v2880_v2  ;;  %v2588_v26 = vld [vmem:[%s3368_s4] sm:$0xff]   ;;  %s2885_s28 = smov 8   ;;  %s2886_s23 = smov 16  }
  0xe3   : > { %v990_v9 = vpack.c.bf16 %v989_v8, %v989_v8  ;;  %s2887_s8 = smov 24   ;;  %s3789_s24 = sld [smem:[#allocation41_spill]] }
  0xe4   : > { %2368 = vmatpush3.bf16.msra.mxu1 %v2586_v4  ;;  %s3791_s7 = scalar_lea.vmem [#allocation8], %s3328_s13  ;;  %s3795_s21 = sld [smem:[#allocation43_spill]] }
  0xe5   : > { %2360 = vmatpush3.bf16.msra.mxu0 %v2587_v5  ;;  %2381 = vmatprep.subr.bf16.mxu1 %v2880_v2  ;;  %s3781_s14 = scalar_lea.vmem %s3780_s0, %s3346_s29 }
  0xe6   : > { %2373 = vmatprep.subr.bf16.mxu0 %v2880_v2  ;;  %v2276_v10 = vld [vmem:[%s3781_s14] ss:$0 sm:$0xff] }
  0xe7   : > { %2370 = vmatmul.mubr.msk.bf16.vlgmr.msra.gmra.mrb[0].mxu1 %vm1015_vm2, %v990_v9  ;;  %s3784_s30 = scalar_lea.vmem %s3783_s26, %s3343_s15  ;;  %s3786_s3 = scalar_lea.vmem %s3785_s9, %s3346_s29 }
  0xe8   : > { %2362 = vmatmul.mubr.msk.bf16.vlgmr.msra.gmra.mrb[0].mxu0 %vm1015_vm2, %v990_v9  ;;  %2383 = vmatprep.mubr.msk.bf16.mxu1 %vm2881_vm1, %v2880_v2  ;;  %v2284_v38 = vld [vmem:[%s3784_s30] ss:$0 sm:$0xff]  ;;  %s3787_s15 = scalar_lea.vmem [#allocation7], %s3328_s13  ;;  %s3803_s13 = sld [smem:[#allocation50_spill]] }
  0xe9   : > { %2377 = vmatprep.mubr.msk.bf16.mxu0 %vm2881_vm1, %v2880_v2  ;;  %2374 = vmatpush3.bf16.msra.mxu0 %v2588_v26  ;;  %v2280_v45 = vld [vmem:[%s3786_s3] ss:$0 sm:$0xff]  ;;  %s3788_s2 = smov %s3787_s15  ;;  %s3790_s17 = scalar_lea.vmem %s3789_s24, %s3346_s29 }
  0xea   : > { %2375 = vmatprep.subr.bf16.mxu0 %v2880_v2  ;;  %s3796_s27 = scalar_lea.vmem %s3795_s21, %s3346_s29  ;;  %s2888_s29 = smov [#allocation10]  }
  0xed   : > { %2376 = vmatpush3.bf16.msra.mxu0 %v2589_v27 }
  0xee   : > { %2387 = vmatprep.subr.bf16.mxu0 %v2880_v2 }
  0xf0   : > { %2378 = vmatmul.mubr.msk.bf16.vlgmr.msra.gmra.mrb[4].mxu0 %vm1015_vm2, %v991_v28 }
  0xf1   : > { %2389 = vmatprep.mubr.msk.bf16.mxu0 %vm2881_vm1, %v2880_v2 }
 0x1ba   : > { %v1116_v12 = vpop.f32.mrb[0].mxu1 }
 0x1bb   : > { %v1117_v13 = vadd.f32 %v2276_v10, %v1116_v12  ;;  %v2371_v14 = vpop.f32.mrb[1].mxu1  ;;  %v1053_v15 = vpop.f32.mrb[0].mxu0 }
 0x1bc   : > { %v1054_v16 = vadd.f32 %v2272_v11, %v1053_v15  ;;  %v1119_v17 = vpop.f32.mrb[2].mxu1  ;;  %v2363_v18 = vpop.f32.mrb[1].mxu0 }
 0x1bd   : > { %v1190_v19 = vpack.c.bf16 %v1117_v13, %v1117_v13  ;;  %v2372_v20 = vpop.f32.mrb[3].mxu1  ;;  %v1056_v21 = vpop.f32.mrb[2].mxu0 }
 0x1be   : > { %v1188_v22 = vmul.f32 0.35355338, %v1054_v16  ;;  %v2364_v23 = vpop.f32.mrb[3].mxu0 }
 0x1bf   : > { %1419 = vrot.lane.b32.xlu1 %v1190_v19, %s2882_s22  ;;  %1308 = vrot.lane.b32.xlu0 %v1190_v19, %s2883_s16  ;;  %v1203_v24 = vsel %vm1198_vm3, %v1190_v19, 0 }
 0x1c0   : > { %v1189_v25 = vpack.c.bf16 %v1188_v22, %v1188_v22  ;;  %2382 = vmatpush3.bf16.xpose.msra.mxu1 %v1203_v24 }
 0x1c1   : > { %2393 = vmatprep.subr.bf16.mxu1 %v2880_v2 }
 0x1c3   : > { %1417 = vrot.lane.b32.xlu1 %v1189_v25, %s2882_s22  ;;  %1305 = vrot.lane.b32.xlu0 %v1189_v25, %s2883_s16  ;;  %v1182_v46 = vpop.f32.mrb[4].mxu0 }
 0x1c4   : > { %v1183_v47 = vadd.f32 %v2280_v45, %v1182_v46  ;;  %v2379_v48 = vpop.f32.mrb[5].mxu0 }
 0x1c5   : > { %v1185_v49 = vpop.f32.mrb[6].mxu0 }
 0x1c6   : > { %v1191_v50 = vpack.c.bf16 %v1183_v47, %v1183_v47  ;;  %v2380_v51 = vpop.f32.mrb[7].mxu0 }
 0x1c7   : > { %1527 = vrot.lane.b32.xlu1 %v1189_v25, %s2884_s5  ;;  %1529 = vrot.lane.b32.xlu0 %v1190_v19, %s2884_s5 }
 0x1c8   : > { %2384 = vmatmul.mubr.msk.bf16.vlgmr.msra.gmra.mrb[4].mxu1 %vm1198_vm3, %v1189_v25  ;;  %v1262_v52 = vsel %vm1260_vm4, %v1191_v50, 0 }
 0x1c9   : > { %2395 = vmatprep.mubr.msk.bf16.mxu1 %vm2881_vm1, %v2880_v2  ;;  %2388 = vmatpush3.bf16.msra.mxu0 %v1262_v52 }
 0x1ca   : > { %2399 = vmatprep.subr.bf16.mxu0 %v2880_v2 }
 0x231   : > { %v1309_v29 = vpop.permute.xlu0 %1308  ;;  %v1420_v31 = vpop.permute.xlu1 %1419 }
 0x232   : > { %v1314_v30 = vsel %vm1198_vm3, %v1309_v29, 0  ;;  %v1425_v33 = vsel %vm1198_vm3, %v1420_v31, 0 }
 0x233   : > { %2394 = vmatpush3.bf16.xpose.msra.mxu1 %v1314_v30 }
 0x234   : > { %2405 = vmatprep.subr.bf16.mxu1 %v2880_v2 }
 0x235   : > { %v1306_v32 = vpop.permute.xlu0 %1305  ;;  %v1418_v35 = vpop.permute.xlu1 %1417 }
 0x239   : > { %v1530_v34 = vpop.permute.xlu0 %1529  ;;  %v1528_v37 = vpop.permute.xlu1 %1527 }
 0x23a   : > { %2396 = vmatmul.mubr.msk.bf16.vlgmr.msra.gmra.mrb[8].mxu1 %vm1198_vm3, %v1306_v32  ;;  %v1535_v36 = vsel %vm1198_vm3, %v1530_v34, 0 }
 0x23b   : > { %2406 = vmatpush3.bf16.xpose.msra.mxu1 %v1425_v33  ;;  %2407 = vmatprep.mubr.msk.bf16.mxu1 %vm2881_vm1, %v2880_v2 }
 0x23c   : > { %2417 = vmatprep.subr.bf16.mxu1 %v2880_v2 }
 0x242   : > { %2408 = vmatmul.mubr.msk.bf16.vlgmr.msra.gmra.mrb[12].mxu1 %vm1198_vm3, %v1418_v35 }
 0x243   : > { %2418 = vmatpush3.bf16.xpose.msra.mxu1 %v1535_v36  ;;  %2419 = vmatprep.mubr.msk.bf16.mxu1 %vm2881_vm1, %v2880_v2 }
 0x244   : > { %2429 = vmatprep.subr.bf16.mxu1 %v2880_v2 }
 0x24a   : > { %2420 = vmatmul.mubr.msk.bf16.vlgmr.msra.gmra.mrb[16].mxu1 %vm1198_vm3, %v1528_v37 }
 0x24b   : > { %2433 = vmatprep.mubr.msk.bf16.mxu1 %vm2881_vm1, %v2880_v2 }
 0x29b   : > { %v1239_v39 = vpop.f32.mrb[4].mxu1 }
 0x29c   : > { %v1240_v40 = vadd.f32 %v2284_v38, %v1239_v39  ;;  %v2385_v41 = vpop.f32.mrb[5].mxu1 }
 0x29d   : > { %v1242_v42 = vpop.f32.mrb[6].mxu1 }
 0x29e   : > { %v2386_v43 = vpop.f32.mrb[7].mxu1  ;;  %v1245_v44 = vsel %vm1198_vm3, %v1240_v40, -inf }
 0x29f   : > { %1246 = vmax.xlane.f32.xlu0 %v1245_v44 }
 0x30d   : > { %v1350_v53 = vpop.f32.mrb[8].mxu1 }
 0x30e   : > { %v1351_v54 = vadd.f32 %v2284_v38, %v1350_v53  ;;  %v2397_v55 = vpop.f32.mrb[9].mxu1 }
 0x30f   : > { %v1353_v56 = vpop.f32.mrb[10].mxu1  ;;  %v2590_v55 = vld [vmem:[%s3787_s15] sm:$0xff]   ;;  %s3800_s15 = sld [smem:[#allocation29_spill]] }
 0x310   : > { %v2398_v57 = vpop.f32.mrb[11].mxu1  ;;  %v1356_v58 = vsel %vm1198_vm3, %v1351_v54, -inf  ;;  %2430 = vmatpush3.bf16.msra.mxu1 %v2590_v55 }
 0x311   : > { %1357 = vmax.xlane.f32.xlu1 %v1356_v58  ;;  %2431 = vmatprep.subr.bf16.mxu1 %v2880_v2 }
 0x315   : > { %v1461_v59 = vpop.f32.mrb[12].mxu1  ;;  %p3804_p5 = scmp.ne.s32.totalorder %s3800_s15, 0 }
 0x316   : > { %v1462_v60 = vadd.f32 %v2284_v38, %v1461_v59  ;;  %v2409_v61 = vpop.f32.mrb[13].mxu1 }
 0x317   : > { %v1464_v62 = vpop.f32.mrb[14].mxu1 }
 0x318   : > { %v2410_v63 = vpop.f32.mrb[15].mxu1  ;;  %v1467_v0 = vsel %vm1198_vm3, %v1462_v60, -inf }
 0x319   : > { %1468 = vmax.xlane.f32.xlu0 %v1467_v0 }
 0x31d   : > { %v1571_v1 = vpop.f32.mrb[16].mxu1 }
 0x31e   : > { %v1572_v3 = vadd.f32 %v2284_v38, %v1571_v1  ;;  %v2421_v4 = vpop.f32.mrb[17].mxu1 }
 0x31f   : > { %v1574_v5 = vpop.f32.mrb[18].mxu1 }
 0x320   : > { %v2422_v7 = vpop.f32.mrb[19].mxu1  ;;  %v1577_v8 = vsel %vm1198_vm3, %v1572_v3, -inf }
 0x321   : > { %1578 = vmax.xlane.f32.xlu0 %v1577_v8 }
 0x32c   : > { %v1247_v9 = vpop.xlane.xlu0 %1246 }
 0x32d   : > { %v1248_v10 = vsub.f32 %v1240_v40, %v1247_v9 }
 0x32f   : > { %v1249_v11 = vmul.f32 1.442695, %v1248_v10 }
 0x331   : > { %2598 = vpow2.f32 %v1249_v11 }
 0x33b   : > { %v2599_v12 = vpop.eup %2598 }
 0x33c   : > { %v1251_v13 = vsel %vm1198_vm3, %v2599_v12, 0.0 }
 0x33d   : > { %1252 = vadd.xlane.f32.xlu1 %v1251_v13 }
 0x34e   : > { %1369 = vrot.lane.b32.xlu1 %v1191_v50, %s2883_s16 }
 0x39e   : > { %v1358_v14 = vpop.xlane.xlu1 %1357 }
 0x39f   : > { %v1359_v15 = vsub.f32 %v1351_v54, %v1358_v14  ;;  %v2293_v14 = vld [vmem:[%s3790_s17] ss:$0 sm:$0xff]  ;;  %s1949_s17 = sshll.u32 %s3413_s12, 4  ;;  %s3599_s17 = int_to_ptr.vmem [resolvable:$true] %s1949_s17 }
 0x3a1   : > { %v1360_v16 = vmul.f32 1.442695, %v1359_v15 }
 0x3a3   : > { %2600 = vpow2.f32 %v1360_v16 }
 0x3a6   : > { %v1469_v17 = vpop.xlane.xlu0 %1468 }
 0x3a7   : > { %v1470_v18 = vsub.f32 %v1462_v60, %v1469_v17  ;;  %v2591_v60 = vld [vmem:[%s3788_s2 + $0x8] sm:$0xff]  }
 0x3a8   : > { %2432 = vmatpush3.bf16.msra.mxu1 %v2591_v60 }
 0x3a9   : > { %v1471_v19 = vmul.f32 1.442695, %v1470_v18  ;;  %2445 = vmatprep.subr.bf16.mxu1 %v2880_v2 }
 0x3ab   : > { %2602 = vpow2.f32 %v1471_v19 }
 0x3ad   : > { %v2601_v20 = vpop.eup %2600 }
 0x3ae   : > { %v1579_v21 = vpop.xlane.xlu0 %1578  ;;  %v1362_v22 = vsel %vm1198_vm3, %v2601_v20, 0.0 }
 0x3af   : > { %v1580_v23 = vsub.f32 %v1572_v3, %v1579_v21  ;;  %1363 = vadd.xlane.f32.xlu0 %v1362_v22 }
 0x3b1   : > { %v1581_v24 = vmul.f32 1.442695, %v1580_v23 }
 0x3b3   : > { %2604 = vpow2.f32 %v1581_v24 }
 0x3b5   : > { %v2603_v25 = vpop.eup %2602 }
 0x3b6   : > { %v1473_v26 = vsel %vm1198_vm3, %v2603_v25, 0.0 }
 0x3b7   : > { %1474 = vadd.xlane.f32.xlu1 %v1473_v26 }
 0x3bd   : > { %v2605_v27 = vpop.eup %2604 }
 0x3be   : > { %v1583_v28 = vsel %vm1198_vm3, %v2605_v27, 0.0 }
 0x3bf   : > { %1584 = vadd.xlane.f32.xlu0 %v1583_v28 }
 0x3c8   : > { %1589 = vrot.lane.b32.xlu1 %v1191_v50, %s2884_s5  ;;  %s2738_s5 = scalar_lea.vmem %s3599_s17, 128 }
 0x3c9   : > { %p2739_p2 = scmp.ne.s32.totalorder %s3599_s17, %s2738_s5 }
 0x3ca   : > { %v1253_v29 = vpop.xlane.xlu1 %1252 }
 0x3cb   : > { %2606 = vrcp.f32 %v1253_v29  ;;  %v2595_v29 = vld [vmem:[%s3390_s18 + $0x8] sm:$0xff]   ;;  %p2740_p12 = pnand %p2739_p2, %p3804_p5 }
 0x3cd   : > { %p2741_p0 = pneg %p2740_p12 }
 0x3ce   : > { %v1370_v31 = vpop.permute.xlu1 %1369 }
 0x3cf   : > { %v1375_v34 = vsel %vm1260_vm4, %v1370_v31, 0 }
 0x3d5   : > { %v2607_v30 = vpop.eup %2606  ;;  %1479 = vrot.lane.b32.xlu0 %v1191_v50, %s2882_s22  ;;  %s3792_s22 = smov %s3791_s7 }
 0x3d6   : > { %v1255_v32 = vmul.f32 %v2607_v30, %v2599_v12  ;;  %v2593_v28 = vld [vmem:[%s3792_s22 + $0x8] sm:$0xff]  }
 0x3d8   : > { %v1256_v33 = vpack.c.bf16 %v1255_v32, %v1255_v32 }
 0x3da   : > { %2390 = vmatmul.mubr.msk.bf16.vlgmr.msra.gmra.mrb[8].mxu0 %vm1198_vm3, %v1256_v33 }
 0x3db   : > { %2400 = vmatpush3.bf16.msra.mxu0 %v1375_v34  ;;  %2401 = vmatprep.mubr.msk.bf16.mxu0 %vm2881_vm1, %v2880_v2  ;;  %v2297_v34 = vld [vmem:[%s968_s1] ss:$0 sm:$0xff] }
 0x3dc   : > { %2411 = vmatprep.subr.bf16.mxu0 %v2880_v2 }
 0x43c   : > { %v1364_v35 = vpop.xlane.xlu0 %1363 }
 0x43d   : > { %2608 = vrcp.f32 %v1364_v35 }
 0x444   : > { %v1475_v36 = vpop.xlane.xlu1 %1474 }
 0x445   : > { %2610 = vrcp.f32 %v1475_v36  ;;  %v2298_v36 = vld [vmem:[%s971_s20] ss:$0 sm:$0xff] }
 0x447   : > { %v2609_v37 = vpop.eup %2608 }
 0x448   : > { %v1366_v38 = vmul.f32 %v2609_v37, %v2601_v20  ;;  %v1590_v45 = vpop.permute.xlu1 %1589 }
 0x449   : > { %v1595_v47 = vsel %vm1260_vm4, %v1590_v45, 0 }
 0x44a   : > { %v1367_v39 = vpack.c.bf16 %v1366_v38, %v1366_v38 }
 0x44c   : > { %v1585_v40 = vpop.xlane.xlu0 %1584  ;;  %2402 = vmatmul.mubr.msk.bf16.vlgmr.msra.gmra.mrb[12].mxu0 %vm1198_vm3, %v1367_v39 }
 0x44d   : > { %2612 = vrcp.f32 %v1585_v40  ;;  %2413 = vmatprep.mubr.msk.bf16.mxu0 %vm2881_vm1, %v2880_v2  ;;  %v2596_v40 = vld [vmem:[%s3390_s18 + $0x10] sm:$0xff]  }
 0x44f   : > { %v2611_v41 = vpop.eup %2610 }
 0x450   : > { %v1477_v42 = vmul.f32 %v2611_v41, %v2603_v25  ;;  %v1480_v43 = vpop.permute.xlu0 %1479  ;;  %v2597_v41 = vld [vmem:[%s3390_s18 + $0x18] sm:$0xff]  }
 0x451   : > { %v1485_v44 = vsel %vm1260_vm4, %v1480_v43, 0 }
 0x452   : > { %2412 = vmatpush3.bf16.msra.mxu0 %v1485_v44  ;;  %v1478_v46 = vpack.c.bf16 %v1477_v42, %v1477_v42  ;;  %v2299_v42 = vld [vmem:[%s3796_s27] ss:$0 sm:$0xff] }
 0x453   : > { %2423 = vmatprep.subr.bf16.mxu0 %v2880_v2 }
 0x455   : > { %2414 = vmatmul.mubr.msk.bf16.vlgmr.msra.gmra.mrb[16].mxu0 %vm1198_vm3, %v1478_v46 }
 0x456   : > { %2424 = vmatpush3.bf16.msra.mxu0 %v1595_v47  ;;  %2425 = vmatprep.mubr.msk.bf16.mxu0 %vm2881_vm1, %v2880_v2 }
 0x457   : > { %v2613_v48 = vpop.eup %2612  ;;  %2437 = vmatprep.subr.bf16.mxu0 %v2880_v2 }
 0x458   : > { %v1587_v49 = vmul.f32 %v2613_v48, %v2605_v27  ;;  %v2592_v27 = vld [vmem:[%s3791_s7] sm:$0xff]  }
 0x45a   : > { %v1588_v50 = vpack.c.bf16 %v1587_v49, %v1587_v49 }
 0x45d   : > { %2426 = vmatmul.mubr.msk.bf16.vlgmr.msra.gmra.mrb[20].mxu0 %vm1198_vm3, %v1588_v50 }
 0x45e   : > { %2441 = vmatprep.mubr.msk.bf16.mxu0 %vm2881_vm1, %v2880_v2  ;;  %2438 = vmatpush3.bf16.msra.mxu0 %v2592_v27 }
 0x45f   : > { %2439 = vmatprep.subr.bf16.mxu0 %v2880_v2 }
 0x462   : > { %2440 = vmatpush3.bf16.msra.mxu0 %v2593_v28 }
 0x4ad   : > { %v1298_v51 = vpop.f32.mrb[8].mxu0 }
 0x4ae   : > { %v2391_v52 = vpop.f32.mrb[9].mxu0 }
 0x4af   : > { %v1301_v53 = vpop.f32.mrb[10].mxu0 }
 0x4b0   : > { %v2392_v54 = vpop.f32.mrb[11].mxu0 }
 0x51f   : > { %v1411_v56 = vpop.f32.mrb[12].mxu0 }
 0x520   : > { %1638 = vrot.lane.b32.xlu1 %v1411_v56, %s2885_s28  ;;  %v2403_v57 = vpop.f32.mrb[13].mxu0 }
 0x521   : > { %v1414_v58 = vpop.f32.mrb[14].mxu0 }
 0x522   : > { %v2404_v59 = vpop.f32.mrb[15].mxu0 }
 0x528   : > { %v1521_v61 = vpop.f32.mrb[16].mxu0 }
 0x529   : > { %1642 = vrot.lane.b32.xlu0 %v1521_v61, %s2886_s23  ;;  %v2415_v62 = vpop.f32.mrb[17].mxu0 }
 0x52a   : > { %v1524_v63 = vpop.f32.mrb[18].mxu0 }
 0x52b   : > { %v2416_v0 = vpop.f32.mrb[19].mxu0 }
 0x530   : > { %v1631_v1 = vpop.f32.mrb[20].mxu0 }
 0x531   : > { %1646 = vrot.lane.b32.xlu1 %v1631_v1, %s2887_s8  ;;  %v2427_v3 = vpop.f32.mrb[21].mxu0 }
 0x532   : > { %v1634_v4 = vpop.f32.mrb[22].mxu0  ;;  %v2309_v3 = vld [vmem:[%s974_s10] ss:$0 sm:$0xff] }
 0x533   : > { %v2428_v5 = vpop.f32.mrb[23].mxu0 }
 0x534   : > { %v2310_v5 = vld [vmem:[%s977_s11] ss:$0 sm:$0xff]  ;;  %s2742_s11 = sshll.u32 %s2888_s29, 4  ;;  %s2743_s11 = int_to_ptr.vmem [resolvable:$false] %s2742_s11 }
 0x535   : > { %s2744_s4 = scalar_lea.vmem %s2743_s11, 256  ;;  %p2745_p8 = scmp.lt.s32.totalorder %s3599_s17, %s2743_s11 }
 0x536   : > { %p2746_p10 = scmp.lt.s32.totalorder %s2744_s4, %s2738_s5 }
 0x538   : > { %p2747_p7 = por %p2746_p10, %p2745_p8 }
 0x53a   : > { %p2748_p13 = pnand %p2747_p7, %p2741_p0 }
 0x592   : > { %v1639_v7 = vpop.permute.xlu1 %1638 }
 0x593   : > { %v1649_v9 = vsel %vm1198_vm3, %v1298_v51, %v1639_v7 }
 0x59b   : > { %v1643_v8 = vpop.permute.xlu0 %1642 }
 0x59c   : > { %v1651_v10 = vsel %vm1650_vm5, %v1649_v9, %v1643_v8 }
 0x5a3   : > { %v1647_v11 = vpop.permute.xlu1 %1646 }
 0x5a4   : > { %v1653_v12 = vsel %vm1652_vm6, %v1651_v10, %v1647_v11 }
 0x5a5   : > { %v1654_v13 = vpack.c.bf16 %v1653_v12, %v1653_v12 }
 0x5a7   : > { %2434 = vmatmul.mubr.msk.bf16.vlgmr.msra.gmra.mrb[20].mxu1 %vm1015_vm2, %v1654_v13 }
 0x5a8   : > { %2453 = vmatprep.mubr.msk.bf16.mxu1 %vm2881_vm1, %v2880_v2 }
 0x67a   : > { %v1715_v15 = vpop.f32.mrb[20].mxu1 }
 0x67b   : > { %v1716_v16 = vadd.f32 %v2293_v14, %v1715_v15  ;;  %v2435_v17 = vpop.f32.mrb[21].mxu1 }
 0x67c   : > { %v1718_v18 = vpop.f32.mrb[22].mxu1 }
 0x67d   : > { %v2436_v19 = vpop.f32.mrb[23].mxu1  ;;  %v1721_v20 = vadd.f32 %v1716_v16, %v3428_v6  ;;  %v2594_v6 = vld [vmem:[%s3390_s18] sm:$0xff]   ;;  %s3798_s18 = sld [smem:[#allocation21_spill]] }
 0x67e   : > { %2446 = vmatpush3.bf16.msra.mxu1 %v2594_v6 }
 0x67f   : > { %v1722_v21 = vsel %vm1015_vm2, %v1721_v20, 0.0  ;;  %2447 = vmatprep.subr.bf16.mxu1 %v2880_v2 }
 0x680   : > { %1723 = vadd.xlane.f32.xlu0 %v1722_v21 }
 0x682   : > { %2448 = vmatpush3.bf16.msra.mxu1 %v2595_v29 }
 0x683   : > { %2449 = vmatprep.subr.bf16.mxu1 %v2880_v2  ;;  %s2312_s24 = sshll.u32 %s3798_s18, 7 }
 0x684   : > { %s3597_s16 = scalar_lea.hbm %s3803_s13, %s2312_s24 }
 0x686   : > { %2450 = vmatpush3.bf16.msra.mxu1 %v2596_v40 }
 0x687   : > { %2451 = vmatprep.subr.bf16.mxu1 %v2880_v2  ;;  %v2303_v2 = vld [vmem:[%s965_s19] ss:$0 sm:$0xff]  ;;  %s3799_s19 = sld [smem:[#allocation31_spill]] }
 0x68a   : > { %2452 = vmatpush3.bf16.msra.mxu1 %v2597_v41 }
 0x68d   : > { %s1936_s10 = scalar_lea.sflag [#allocation4], %s3799_s19 }
 0x70d   : > { %v1724_v22 = vpop.xlane.xlu0 %1723 }
 0x70e   : > { %v1726_v23 = vmul.f32 0.03125, %v1724_v22 }
 0x710   : > { %v1727_v24 = vsub.f32 %v1721_v20, %v1726_v23 }
 0x712   : > { %v1728_v25 = vmul.f32 %v1727_v24, %v1727_v24 }
 0x714   : > { %v1729_v26 = vsel %vm1015_vm2, %v1728_v25, 0.0 }
 0x715   : > { %1730 = vadd.xlane.f32.xlu1 %v1729_v26 }
 0x7a2   : > { %v1731_v30 = vpop.xlane.xlu1 %1730 }
 0x7a3   : > { %v1732_v31 = vmul.f32 0.03125, %v1731_v30 }
 0x7a5   : > { %v1733_v32 = vadd.f32 1e-05, %v1732_v31 }
 0x7a7   : > { %2614 = vrsqrt.f32 %v1733_v32 }
 0x7b1   : > { %v2615_v33 = vpop.eup %2614 }
 0x7b2   : > { %v1735_v35 = vmul.f32 %v2615_v33, %v1727_v24 }
 0x7b4   : > { %v1743_v37 = vmul.f32 %v2297_v34, %v1735_v35 }
 0x7b6   : > { %v1751_v38 = vadd.f32 %v2298_v36, %v1743_v37 }
 0x7b8   : > { %v1752_v39 = vpack.c.bf16 %v1751_v38, %v1751_v38 }
 0x7ba   : > { %2442 = vmatmul.mubr.msk.bf16.vlgmr.msra.gmra.mrb[24].mxu0 %vm1015_vm2, %v1752_v39 }
 0x88d   : > { %v1813_v43 = vpop.f32.mrb[24].mxu0 }
 0x88e   : > { %v1814_v44 = vadd.f32 %v2299_v42, %v1813_v43  ;;  %v2443_v45 = vpop.f32.mrb[25].mxu0 }
 0x88f   : > { %v1816_v46 = vpop.f32.mrb[26].mxu0 }
 0x890   : > { %v1819_v47 = vmax.f32 %v1814_v44, 0.0  ;;  %v2444_v48 = vpop.f32.mrb[27].mxu0 }
 0x892   : > { %v1820_v49 = vpack.c.bf16 %v1819_v47, %v1819_v47 }
 0x894   : > { %2454 = vmatmul.mubr.msk.bf16.vlgmr.msra.gmra.mrb[24].mxu1 %vm1860_vm7, %v1820_v49 }
 0x967   : > { %v1898_v50 = vpop.f32.mrb[24].mxu1 }
 0x968   : > { %v1899_v51 = vadd.f32 %v2303_v2, %v1898_v50  ;;  %v2455_v52 = vpop.f32.mrb[25].mxu1 }
 0x969   : > { %v1901_v53 = vpop.f32.mrb[26].mxu1 }
 0x96a   : > { %v2456_v54 = vpop.f32.mrb[27].mxu1  ;;  %v1904_v55 = vadd.f32 %v1899_v51, %v1751_v38 }
 0x96c   : > { %v1905_v56 = vsel %vm1015_vm2, %v1904_v55, 0.0 }
 0x96d   : > { %1906 = vadd.xlane.f32.xlu0 %v1905_v56 }
 0x9fa   : > { %v1907_v57 = vpop.xlane.xlu0 %1906 }
 0x9fb   : > { %v1908_v58 = vmul.f32 0.03125, %v1907_v57 }
 0x9fd   : > { %v1909_v59 = vsub.f32 %v1904_v55, %v1908_v58 }
 0x9ff   : > { %v1910_v60 = vmul.f32 %v1909_v59, %v1909_v59 }
 0xa01   : > { %v1911_v61 = vsel %vm1015_vm2, %v1910_v60, 0.0 }
 0xa02   : > { %1912 = vadd.xlane.f32.xlu0 %v1911_v61 }
 0xa8f   : > { %v1913_v62 = vpop.xlane.xlu0 %1912 }
 0xa90   : > { %v1914_v63 = vmul.f32 0.03125, %v1913_v62 }
 0xa92   : > { %v1915_v0 = vadd.f32 1e-05, %v1914_v63 }
 0xa94   : > { %2616 = vrsqrt.f32 %v1915_v0 }
 0xa9e   : > { %v2617_v1 = vpop.eup %2616 }
 0xa9f   : > { %v1917_v4 = vmul.f32 %v2617_v1, %v1909_v59 }
 0xaa1   : > { %v1925_v7 = vmul.f32 %v2309_v3, %v1917_v4 }
 0xaa3   : > { %v1933_v8 = vadd.f32 %v2310_v5, %v1925_v7 }
 0xaa5   : > { %1934 = vst.msk [vmem:[%s3413_s12] sm:$0xff] %vm1015_vm2, %v1933_v8 }
 0xaa6   : > { %2751 = shalt.err (!%p2748_p13)
}
 0xaa7   : > { %s2752_s12 = scalar_lea.hbm %s3597_s16, 128  ;;  %s2756_s30 = scalar_lea.hbm %s3803_s13, 256 }
 0xaa8   : > { %p2753_p6 = scmp.ne.s32.totalorder %s3597_s16, %s2752_s12  ;;  %p2757_p3 = scmp.lt.u32.totalorder %s3597_s16, %s3803_s13 }
 0xaa9   : > { %p2758_p9 = scmp.lt.u32.totalorder %s2756_s30, %s2752_s12  ;;  %p2760_p2 = scmp.lt.u32.totalorder %s2752_s12, %s3597_s16 }
 0xaaa   : > { %p2754_p11 = pnand %p2753_p6, %p3804_p5 }
 0xaab   : > { %p2759_p4 = por %p2758_p9, %p2757_p3 }
 0xaac   : > { %p2755_p1 = pneg %p2754_p11 }
 0xaad   : > { %p2761_p12 = por %p2760_p2, %p2759_p4 }
 0xaaf   : > { %p2762_p0 = pnand %p2761_p12, %p2755_p1 }
 0xab1   : > { %2765 = shalt.err (!%p2762_p0)
}
 0xab2   : > { %2465 = dma.vmem_to_hbm [thread:$0]  (%p3804_p5), %s3599_s17, 128, %s3597_s16, %s1936_s10  }
 0xab3 PF: > { %s3805_s27 = sld [smem:[#allocation24_spill]]  ;;  %s3806_s20 = sld [smem:[#allocation18_spill]] }
 0xab4   : > { %s3807_s9 = sld [smem:[#allocation30_spill]] }
 0xab9   : > { %p2485_p8 = scmp.ge.s32.totalorder %s3805_s27, 2  ;;  %s1961_s3 = sand.u32 1, %s3806_s20  }
 0xaba   : > { %p3808_p10 = scmp.ne.s32.totalorder %s3807_s9, 0  ;;  %s1962_s18 = scalar_lea.sflag [#allocation4], %s1961_s3 }
 0xabc   : > { %p2481_p7 = pnand %p2485_p8, %p3808_p10 }
 0xabe   : > { %2827 = dma.done.wait (!%p2481_p7), %s1962_s18, 128  }
 0xabf   : > { %2829 = vsyncadd (!%p2481_p7), %s1962_s18, 4294967168  ;;  %s41_s3 = sadd.s32 1, %s3805_s27   ;;  %s3809_s0 = sld [smem:[#allocation16_spill]] }
 0xac0   : > { %p38_p13 = scmp.ge.s32.totalorder %s41_s3, 6   ;;  %s3810_s30 = sld [smem:[#allocation17_spill]] }
 0xac1   : > { %s3811_s20 = sld [smem:[#allocation27_spill]]  ;;  %s3812_s21 = sld [smem:[#allocation19_spill]] }
 0xac2   : > { %s3813_s1 = sld [smem:[#allocation20_spill]]  ;;  %s3814_s22 = sld [smem:[#allocation28_spill]] }
 0xac3   : > { %s3815_s2 = sld [smem:[#allocation22_spill]]  ;;  %s3816_s23 = sld [smem:[#allocation23_spill]] }
 0xac4   : > { %s3817_s24 = sld [smem:[#allocation25_spill]]  ;;  %s3818_s25 = sld [smem:[#allocation26_spill]] }
 0xac5   :  { %40 = sbr.rel (!%p38_p13) target bundleno = 33 (0x21), region = 227 }
 0xacc   :  { %1967 = vsyncpa [#allocation3], 1 }
 0xacd   :  { %1969 = vsyncpa [#allocation3 + $0x1], 1 }
 0xace   :  { %1970 = vsyncpa [#allocation6], 1 }
 0xacf   :  { %1972 = vsyncpa [#allocation6 + $0x1], 1 }
 0xad0   :  { %1973 = vsyncpa [#allocation9], 1 }
 0xad1   :  { %1975 = vsyncpa [#allocation9 + $0x1], 1 }
 0xad2   :  { %1976 = vsyncpa [#allocation4], 1 }
 0xad3   :  { %1978 = vsyncpa [#allocation4 + $0x1], 1 }

</bundles_post_ra>
